<compile_context>
chip_gen: v5e
topology: v5e:2x2
jax: 0.10.0
libtpu: 0.0.40
codegen_flags: <defaults>
</compile_context>

<pallas_src>
import functools

import jax
import jax.numpy as jnp
from jax import lax
from jax.experimental import pallas as pl
from jax.experimental.pallas import tpu as pltpu


def _round_up(x, m):
    return (x + m - 1) // m * m


def _dsconv_kernel(x_hbm, wd_ref, bd_ref, wp_ref, bp_ref, o_ref,
                   x_tile, copy_sem, *, k, TH, W_out, Cp, use_bf16_mxu):
    """Fused depthwise (k x k, groups=C) + pointwise (1x1) conv for one
    (batch, H-band) grid step, with manual double-buffered band DMA.

    x_hbm   : (N, H_al + 2p, Wp, Cp)   padded input, left in HBM (pl.ANY)
    wd_ref  : (k, k, Cp)               depthwise weights (resident)
    bd_ref  : (1, Cp)                  depthwise bias
    wp_ref  : (Cp, Op)                 pointwise weights (resident)
    bp_ref  : (1, Op)                  pointwise bias
    o_ref   : (TH, W_out, Op)          output row band (batch dim squeezed)
    x_tile  : (2, THp, Wp, Cp)         double-buffered VMEM band scratch
    copy_sem: DMA semaphores, one per slot
    """
    p = k // 2
    THp = TH + 2 * p
    n = pl.program_id(0)
    j = pl.program_id(1)
    nH = pl.num_programs(1)
    slot = j & 1

    def band_copy(src_n, src_j, dst_slot):
        row0 = pl.multiple_of(src_j * TH, 8)        # TH is a multiple of 8
        return pltpu.make_async_copy(
            x_hbm.at[src_n, pl.ds(row0, THp)],
            x_tile.at[dst_slot],
            copy_sem.at[dst_slot])

    # Prime the pipeline: the first band of each image is an exposed copy.
    @pl.when(j == 0)
    def _():
        band_copy(n, 0, 0).start()

    # Prefetch the next band of the *same* image into the other slot before
    # computing on the current one.  Restricting prefetch to the current image
    # keeps this correct under megacore sharding of the parallel batch axis
    # (the H axis is "arbitrary", so bands of one image run in order on one
    # core, and the previous DMA into the target slot was already consumed).
    @pl.when(j + 1 < nH)
    def _():
        band_copy(n, j + 1, 1 - slot).start()

    # Wait only on the slot we are about to use.
    band_copy(n, j, slot).wait()

    xp = x_tile.at[slot]                     # Ref view: (THp, Wp, Cp), no load

    # Depthwise conv: bias + sum of k*k shifted windows, scaled per channel.
    # dy offsets hit the (cheap) non-tiled dim; dx offsets are small sublane
    # shifts of a VMEM-resident tile.
    acc = jnp.broadcast_to(bd_ref[0, :], (TH, W_out, Cp))
    for dy in range(k):
        for dx in range(k):
            win = xp[dy:dy + TH, dx:dx + W_out, :]
            acc = acc + win * wd_ref[dy, dx, :]

    # Pointwise 1x1 conv == matmul over the lane-padded channel axis (MXU).
    # W_out is a multiple of 8, so these reshapes are free relabelings.
    a2 = acc.reshape(TH * W_out, Cp)
    w2 = wp_ref[...]
    if use_bf16_mxu:
        # Opt-in: bf16 MXU operands, f32 accumulation (loosens tolerance).
        a2 = a2.astype(jnp.bfloat16)
        w2 = w2.astype(jnp.bfloat16)
    y = jnp.dot(a2, w2, preferred_element_type=jnp.float32)
    y = y + bp_ref[0, :]
    o_ref[...] = y.reshape(TH, W_out, -1).astype(o_ref.dtype)


def dsconv2d(x_nchw, w_depth, b_depth, w_point, b_point, *, kernel_size,
             use_bf16_mxu=False):
    """DSConv2d forward.

    x_nchw : (N, C, H, W)  float32
    w_depth: (C, 1, k, k)  PyTorch depthwise conv weight layout
    b_depth: (C,)
    w_point: (O, C, 1, 1)  PyTorch pointwise conv weight layout
    b_point: (O,)
    returns: (N, O, H, W)
    """
    N, C, H, W = x_nchw.shape
    O = w_point.shape[0]
    k = kernel_size
    if k % 2 != 1:
        # padding=k//2 with same-size output only matches nn.Conv2d for odd k.
        raise ValueError("dsconv2d only supports odd kernel_size")
    p = k // 2

    # Lane-dense channel dims; sublane-aligned width.
    Cp = _round_up(C, 128)
    Op = _round_up(O, 128)
    W_al = _round_up(W, 8)                    # compute width (aligned)
    Wp_al = _round_up(W_al + 2 * p, 8)        # padded input width (aligned)

    # ---- generation-aware VMEM budget --------------------------------------
    try:
        info = pltpu.get_tpu_info()
        vmem_cap = int(getattr(info, "vmem_capacity_bytes",
                               64 * 1024 * 1024))
    except Exception:                       # conservative (v7x-sized) fallback
        vmem_cap = 64 * 1024 * 1024
    vmem_limit = int(vmem_cap * 0.75)       # headroom for compiler scratch
    target = int(vmem_limit * 0.7)          # budget for our explicit buffers

    in_bytes = 4                            # f32 band staging
    bytes_per_row = (2 * Wp_al * Cp * in_bytes   # double-buffered input band
                     + 2 * W_al * Op * 4         # double-buffered output band
                     + W_al * Cp * 4             # depthwise accumulator temp
                     + W_al * Op * 4)            # pointwise result temp
    fixed = (2 * 2 * p * Wp_al * Cp * in_bytes                # halo rows (x2)
             + 2 * 4 * (k * k * Cp + Cp + Cp * Op + Op))      # resident weights
    budget_rows = max(8, (target - fixed) // max(bytes_per_row, 1))

    # Row-band size: multiple of 8, as large as the budget allows, but keep at
    # least 2 bands (when H permits) so the cross-band prefetch has work to
    # hide and megacore has some H-granularity.
    TH = min(int(budget_rows), _round_up(H, 8))
    TH = max(8, (TH // 8) * 8)
    if H > 8 and pl.cdiv(H, TH) < 2:
        TH = max(8, _round_up(pl.cdiv(H, 2), 8))
    nH = pl.cdiv(H, TH)
    H_al = nH * TH
    THp = TH + 2 * p

    # NCHW -> NHWC (channels on lanes; module contract is NCHW so the boundary
    # transposes are unavoidable), then one pad covering the spatial halo,
    # H/W alignment and channel lane padding.
    # TODO(synk): if the surrounding model is channels-last, consume NHWC
    # directly and drop these boundary transposes / the final slice.
    x_nhwc = jnp.transpose(x_nchw, (0, 2, 3, 1))
    x_pad = jnp.pad(
        x_nhwc,
        ((0, 0),
         (p, H_al + p - H),
         (p, Wp_al - W - p),
         (0, Cp - C)))

    # Repack + zero-pad weights (padded channels contribute exactly 0).
    wd = jnp.transpose(w_depth[:, 0, :, :], (1, 2, 0))          # (k, k, C)
    wd = jnp.pad(wd, ((0, 0), (0, 0), (0, Cp - C)))             # (k, k, Cp)
    bd = jnp.pad(b_depth, (0, Cp - C)).reshape(1, Cp)           # (1, Cp)
    wp = jnp.transpose(w_point[:, :, 0, 0], (1, 0))             # (C, O)
    wp = jnp.pad(wp, ((0, Cp - C), (0, Op - O)))                # (Cp, Op)
    bp = jnp.pad(b_point, (0, Op - O)).reshape(1, Op)           # (1, Op)

    kernel = functools.partial(_dsconv_kernel, k=k, TH=TH, W_out=W_al, Cp=Cp,
                               use_bf16_mxu=use_bf16_mxu)

    # Advisory cost estimate (real, unpadded work) so XLA schedules the
    # boundary transposes / pad around the custom call sensibly.
    flops = 2 * N * H * W * C * (k * k + O)
    bytes_accessed = 4 * (N * H * W * (C + O) + C * k * k + C * O + C + O)
    cost = pl.CostEstimate(flops=flops, transcendentals=0,
                           bytes_accessed=bytes_accessed)

    out_nhwc = pl.pallas_call(
        kernel,
        out_shape=jax.ShapeDtypeStruct((N, H_al, W_al, Op), x_nchw.dtype),
        grid_spec=pltpu.PrefetchScalarGridSpec(
            num_scalar_prefetch=0,
            grid=(N, nH),
            in_specs=[
                pl.BlockSpec(memory_space=pl.ANY),               # x stays in HBM
                pl.BlockSpec((k, k, Cp), lambda n, j: (0, 0, 0)),
                pl.BlockSpec((1, Cp), lambda n, j: (0, 0)),
                pl.BlockSpec((Cp, Op), lambda n, j: (0, 0)),
                pl.BlockSpec((1, Op), lambda n, j: (0, 0)),
            ],
            out_specs=pl.BlockSpec((None, TH, W_al, Op),
                                   lambda n, j: (n, j, 0, 0)),
            scratch_shapes=[
                pltpu.VMEM((2, THp, Wp_al, Cp), jnp.float32),
                pltpu.SemaphoreType.DMA((2,)),
            ],
        ),
        compiler_params=pltpu.CompilerParams(
            dimension_semantics=("parallel", "arbitrary"),
            vmem_limit_bytes=vmem_limit),
        cost_estimate=cost,
    )(x_pad, wd, bd, wp, bp)

    # Drop alignment padding and return to NCHW for PyTorch semantics.
    out = out_nhwc[:, :H, :W, :O]
    return jnp.transpose(out, (0, 3, 1, 2))


def _reference_dsconv2d(x, w_depth, b_depth, w_point, b_point, *, kernel_size):
    """Pure-JAX reference (lax conv) in NCHW, mirroring nn.Conv2d."""
    C = x.shape[1]
    p = kernel_size // 2
    dn = lax.conv_dimension_numbers(x.shape, w_depth.shape,
                                    ("NCHW", "OIHW", "NCHW"))
    out = lax.conv_general_dilated(
        x, w_depth, window_strides=(1, 1), padding=((p, p), (p, p)),
        dimension_numbers=dn, feature_group_count=C)
    out = out + b_depth.reshape(1, C, 1, 1)
    dn2 = lax.conv_dimension_numbers(out.shape, w_point.shape,
                                     ("NCHW", "OIHW", "NCHW"))
    out2 = lax.conv_general_dilated(
        out, w_point, window_strides=(1, 1), padding=((0, 0), (0, 0)),
        dimension_numbers=dn2)
    return out2 + b_point.reshape(1, -1, 1, 1)


if __name__ == "__main__":
    N, C, H, W = 2, 4, 16, 16
    O = 8
    K = 3

    key = jax.random.PRNGKey(0)
    kx, kwd, kbd, kwp, kbp = jax.random.split(key, 5)

    x = jax.random.normal(kx, (N, C, H, W), dtype=jnp.float32)
    # Deterministic parameter init (synthetic; shapes follow nn.Conv2d).
    w_depth = jax.random.normal(kwd, (C, 1, K, K), dtype=jnp.float32) * 0.1
    b_depth = jax.random.normal(kbd, (C,), dtype=jnp.float32) * 0.1
    w_point = jax.random.normal(kwp, (O, C, 1, 1), dtype=jnp.float32) * 0.1
    b_point = jax.random.normal(kbp, (O,), dtype=jnp.float32) * 0.1

    out = dsconv2d(x, w_depth, b_depth, w_point, b_point, kernel_size=K)
    out = jax.block_until_ready(out)

    ref = _reference_dsconv2d(x, w_depth, b_depth, w_point, b_point,
                              kernel_size=K)
    assert out.shape == (N, O, H, W), out.shape
    assert jnp.allclose(out, ref, atol=1e-4, rtol=1e-4), (
        float(jnp.max(jnp.abs(out - ref))))

    print("KERNEL_OK")
</pallas_src>

<mosaic_0001>
module attributes {stable_mosaic.version = 11 : i64} {
  func.func @_dsconv_kernel(%arg0: i32, %arg1: i32, %arg2: memref<2x18x24x128xf32, #tpu.memory_space<any>>, %arg3: memref<3x3x128xf32, #tpu.memory_space<vmem>>, %arg4: memref<1x128xf32, #tpu.memory_space<vmem>>, %arg5: memref<128x128xf32, #tpu.memory_space<vmem>>, %arg6: memref<1x128xf32, #tpu.memory_space<vmem>>, %arg7: memref<1x8x16x128xf32, #tpu.memory_space<vmem>>, %arg8: memref<2x10x24x128xf32, #tpu.memory_space<vmem>>, %arg9: memref<2x!tpu.dma_semaphore, #tpu.memory_space<semaphore_mem>>) attributes {dimension_semantics = [#tpu.dimension_semantics<parallel>, #tpu.dimension_semantics<arbitrary>], iteration_bounds = array<i64: 2, 2>, scalar_prefetch = 0 : i64, scratch_operands = 2 : i64, tpu.core_type = #tpu.core_type<tc>, window_params = [{}, {pipeline_mode = #tpu.pipeline_mode<synchronous>, transform_indices = @transform_1, window_bounds = array<i64: 3, 3, 128>}, {pipeline_mode = #tpu.pipeline_mode<synchronous>, transform_indices = @transform_2, window_bounds = array<i64: 1, 128>}, {pipeline_mode = #tpu.pipeline_mode<synchronous>, transform_indices = @transform_3, window_bounds = array<i64: 128, 128>}, {pipeline_mode = #tpu.pipeline_mode<synchronous>, transform_indices = @transform_4, window_bounds = array<i64: 1, 128>}, {transform_indices = @transform_5, window_bounds = array<i64: 1, 8, 16, 128>}]} {
    %c1_i32 = arith.constant 1 : i32
    %0 = arith.andi %arg1, %c1_i32 : i32
    %c0_i32 = arith.constant 0 : i32
    %1 = arith.cmpi eq, %arg1, %c0_i32 : i32
    %2 = arith.extui %1 : i1 to i32
    %c0_i32_0 = arith.constant 0 : i32
    %3 = arith.cmpi ne, %2, %c0_i32_0 : i32
    scf.if %3 {
      %c0_i32_96 = arith.constant 0 : i32
      %113 = tpu.assume_multiple %c0_i32_96, 8 : i32
      %c0_i32_97 = arith.constant 0 : i32
      %c0_i32_98 = arith.constant 0 : i32
      %c0_i32_99 = arith.constant 0 : i32
      %c0_i32_100 = arith.constant 0 : i32
      %114 = tpu.memref_slice %arg2[%arg0, %113, %c0_i32_99, %c0_i32_100] : memref<2x18x24x128xf32, #tpu.memory_space<any>> -> memref<1x10x24x128xf32, #tpu.memory_space<any>>
      %115 = tpu.memref_squeeze %114 : memref<1x10x24x128xf32, #tpu.memory_space<any>> -> memref<10x24x128xf32, #tpu.memory_space<any>>
      %c0_i32_101 = arith.constant 0 : i32
      %c0_i32_102 = arith.constant 0 : i32
      %c0_i32_103 = arith.constant 0 : i32
      %116 = tpu.memref_slice %arg8[%c0_i32_97, %c0_i32_101, %c0_i32_102, %c0_i32_103] : memref<2x10x24x128xf32, #tpu.memory_space<vmem>> -> memref<1x10x24x128xf32, #tpu.memory_space<vmem>>
      %117 = tpu.memref_squeeze %116 : memref<1x10x24x128xf32, #tpu.memory_space<vmem>> -> memref<10x24x128xf32, #tpu.memory_space<vmem>>
      %118 = tpu.memref_slice %arg9[%c0_i32_98] : memref<2x!tpu.dma_semaphore, #tpu.memory_space<semaphore_mem>> -> memref<1x!tpu.dma_semaphore, #tpu.memory_space<semaphore_mem>>
      %119 = tpu.memref_squeeze %118 : memref<1x!tpu.dma_semaphore, #tpu.memory_space<semaphore_mem>> -> memref<!tpu.dma_semaphore, #tpu.memory_space<semaphore_mem>>
      tpu.enqueue_dma source(%115 : memref<10x24x128xf32, #tpu.memory_space<any>>) target(%117 : memref<10x24x128xf32, #tpu.memory_space<vmem>>) target_semaphore(%119 : memref<!tpu.dma_semaphore, #tpu.memory_space<semaphore_mem>>)
    } else {
    }
    %c1_i32_1 = arith.constant 1 : i32
    %4 = arith.addi %arg1, %c1_i32_1 : i32
    %c2_i32 = arith.constant 2 : i32
    %5 = arith.cmpi slt, %4, %c2_i32 : i32
    %6 = arith.extui %5 : i1 to i32
    %c0_i32_2 = arith.constant 0 : i32
    %7 = arith.cmpi ne, %6, %c0_i32_2 : i32
    scf.if %7 {
      %c1_i32_96 = arith.constant 1 : i32
      %113 = arith.addi %arg1, %c1_i32_96 : i32
      %c1_i32_97 = arith.constant 1 : i32
      %114 = arith.subi %c1_i32_97, %0 : i32
      %c8_i32_98 = arith.constant 8 : i32
      %115 = arith.muli %113, %c8_i32_98 : i32
      %116 = tpu.assume_multiple %115, 8 : i32
      %c0_i32_99 = arith.constant 0 : i32
      %c0_i32_100 = arith.constant 0 : i32
      %117 = tpu.memref_slice %arg2[%arg0, %116, %c0_i32_99, %c0_i32_100] : memref<2x18x24x128xf32, #tpu.memory_space<any>> -> memref<1x10x24x128xf32, #tpu.memory_space<any>>
      %118 = tpu.memref_squeeze %117 : memref<1x10x24x128xf32, #tpu.memory_space<any>> -> memref<10x24x128xf32, #tpu.memory_space<any>>
      %c0_i32_101 = arith.constant 0 : i32
      %c0_i32_102 = arith.constant 0 : i32
      %c0_i32_103 = arith.constant 0 : i32
      %119 = tpu.memref_slice %arg8[%114, %c0_i32_101, %c0_i32_102, %c0_i32_103] : memref<2x10x24x128xf32, #tpu.memory_space<vmem>> -> memref<1x10x24x128xf32, #tpu.memory_space<vmem>>
      %120 = tpu.memref_squeeze %119 : memref<1x10x24x128xf32, #tpu.memory_space<vmem>> -> memref<10x24x128xf32, #tpu.memory_space<vmem>>
      %121 = tpu.memref_slice %arg9[%114] : memref<2x!tpu.dma_semaphore, #tpu.memory_space<semaphore_mem>> -> memref<1x!tpu.dma_semaphore, #tpu.memory_space<semaphore_mem>>
      %122 = tpu.memref_squeeze %121 : memref<1x!tpu.dma_semaphore, #tpu.memory_space<semaphore_mem>> -> memref<!tpu.dma_semaphore, #tpu.memory_space<semaphore_mem>>
      tpu.enqueue_dma source(%118 : memref<10x24x128xf32, #tpu.memory_space<any>>) target(%120 : memref<10x24x128xf32, #tpu.memory_space<vmem>>) target_semaphore(%122 : memref<!tpu.dma_semaphore, #tpu.memory_space<semaphore_mem>>)
    } else {
    }
    %c8_i32 = arith.constant 8 : i32
    %8 = arith.muli %arg1, %c8_i32 : i32
    %9 = tpu.assume_multiple %8, 8 : i32
    %c0_i32_3 = arith.constant 0 : i32
    %c0_i32_4 = arith.constant 0 : i32
    %10 = tpu.memref_slice %arg2[%arg0, %9, %c0_i32_3, %c0_i32_4] : memref<2x18x24x128xf32, #tpu.memory_space<any>> -> memref<1x10x24x128xf32, #tpu.memory_space<any>>
    %11 = tpu.memref_squeeze %10 : memref<1x10x24x128xf32, #tpu.memory_space<any>> -> memref<10x24x128xf32, #tpu.memory_space<any>>
    %c0_i32_5 = arith.constant 0 : i32
    %c0_i32_6 = arith.constant 0 : i32
    %c0_i32_7 = arith.constant 0 : i32
    %12 = tpu.memref_slice %arg8[%0, %c0_i32_5, %c0_i32_6, %c0_i32_7] : memref<2x10x24x128xf32, #tpu.memory_space<vmem>> -> memref<1x10x24x128xf32, #tpu.memory_space<vmem>>
    %13 = tpu.memref_squeeze %12 : memref<1x10x24x128xf32, #tpu.memory_space<vmem>> -> memref<10x24x128xf32, #tpu.memory_space<vmem>>
    %14 = tpu.memref_slice %arg9[%0] : memref<2x!tpu.dma_semaphore, #tpu.memory_space<semaphore_mem>> -> memref<1x!tpu.dma_semaphore, #tpu.memory_space<semaphore_mem>>
    %15 = tpu.memref_squeeze %14 : memref<1x!tpu.dma_semaphore, #tpu.memory_space<semaphore_mem>> -> memref<!tpu.dma_semaphore, #tpu.memory_space<semaphore_mem>>
    tpu.wait_dma2 semaphore(%15 : memref<!tpu.dma_semaphore, #tpu.memory_space<semaphore_mem>>) src(%11 : memref<10x24x128xf32, #tpu.memory_space<any>>) dst(%13 : memref<10x24x128xf32, #tpu.memory_space<vmem>>)
    %c0 = arith.constant 0 : index
    %c0_8 = arith.constant 0 : index
    %16 = vector.load %arg4[%c0, %c0_8] : memref<1x128xf32, #tpu.memory_space<vmem>>, vector<1x128xf32>
    %17 = vector.shape_cast %16 : vector<1x128xf32> to vector<128xf32>
    %18 = vector.shape_cast %17 : vector<128xf32> to vector<1x1x128xf32>
    %19 = vector.broadcast %18 : vector<1x1x128xf32> to vector<8x16x128xf32>
    %c0_i32_9 = arith.constant 0 : i32
    %c0_i32_10 = arith.constant 0 : i32
    %c0_i32_11 = arith.constant 0 : i32
    %20 = tpu.memref_slice %arg8[%0, %c0_i32_9, %c0_i32_10, %c0_i32_11] : memref<2x10x24x128xf32, #tpu.memory_space<vmem>> -> memref<1x10x24x128xf32, #tpu.memory_space<vmem>>
    %21 = tpu.memref_squeeze %20 : memref<1x10x24x128xf32, #tpu.memory_space<vmem>> -> memref<10x24x128xf32, #tpu.memory_space<vmem>>
    %c0_12 = arith.constant 0 : index
    %c0_13 = arith.constant 0 : index
    %c0_14 = arith.constant 0 : index
    %22 = vector.load %21[%c0_12, %c0_13, %c0_14] : memref<10x24x128xf32, #tpu.memory_space<vmem>>, vector<8x16x128xf32>
    %c0_15 = arith.constant 0 : index
    %c0_16 = arith.constant 0 : index
    %c0_17 = arith.constant 0 : index
    %23 = vector.load %arg3[%c0_15, %c0_16, %c0_17] : memref<3x3x128xf32, #tpu.memory_space<vmem>>, vector<1x1x128xf32>
    %24 = vector.shape_cast %23 : vector<1x1x128xf32> to vector<128xf32>
    %25 = vector.shape_cast %24 : vector<128xf32> to vector<1x1x128xf32>
    %26 = vector.broadcast %25 : vector<1x1x128xf32> to vector<8x16x128xf32>
    %27 = arith.mulf %22, %26 : vector<8x16x128xf32>
    %28 = arith.addf %19, %27 : vector<8x16x128xf32>
    %c0_i32_18 = arith.constant 0 : i32
    %c0_i32_19 = arith.constant 0 : i32
    %c0_i32_20 = arith.constant 0 : i32
    %29 = tpu.memref_slice %arg8[%0, %c0_i32_18, %c0_i32_19, %c0_i32_20] : memref<2x10x24x128xf32, #tpu.memory_space<vmem>> -> memref<1x10x24x128xf32, #tpu.memory_space<vmem>>
    %30 = tpu.memref_squeeze %29 : memref<1x10x24x128xf32, #tpu.memory_space<vmem>> -> memref<10x24x128xf32, #tpu.memory_space<vmem>>
    %c0_21 = arith.constant 0 : index
    %c1 = arith.constant 1 : index
    %c0_22 = arith.constant 0 : index
    %31 = vector.load %30[%c0_21, %c1, %c0_22] : memref<10x24x128xf32, #tpu.memory_space<vmem>>, vector<8x16x128xf32>
    %c0_23 = arith.constant 0 : index
    %c1_24 = arith.constant 1 : index
    %c0_25 = arith.constant 0 : index
    %32 = vector.load %arg3[%c0_23, %c1_24, %c0_25] : memref<3x3x128xf32, #tpu.memory_space<vmem>>, vector<1x1x128xf32>
    %33 = vector.shape_cast %32 : vector<1x1x128xf32> to vector<128xf32>
    %34 = vector.shape_cast %33 : vector<128xf32> to vector<1x1x128xf32>
    %35 = vector.broadcast %34 : vector<1x1x128xf32> to vector<8x16x128xf32>
    %36 = arith.mulf %31, %35 : vector<8x16x128xf32>
    %37 = arith.addf %28, %36 : vector<8x16x128xf32>
    %c0_i32_26 = arith.constant 0 : i32
    %c0_i32_27 = arith.constant 0 : i32
    %c0_i32_28 = arith.constant 0 : i32
    %38 = tpu.memref_slice %arg8[%0, %c0_i32_26, %c0_i32_27, %c0_i32_28] : memref<2x10x24x128xf32, #tpu.memory_space<vmem>> -> memref<1x10x24x128xf32, #tpu.memory_space<vmem>>
    %39 = tpu.memref_squeeze %38 : memref<1x10x24x128xf32, #tpu.memory_space<vmem>> -> memref<10x24x128xf32, #tpu.memory_space<vmem>>
    %c0_29 = arith.constant 0 : index
    %c2 = arith.constant 2 : index
    %c0_30 = arith.constant 0 : index
    %40 = vector.load %39[%c0_29, %c2, %c0_30] : memref<10x24x128xf32, #tpu.memory_space<vmem>>, vector<8x16x128xf32>
    %c0_31 = arith.constant 0 : index
    %c2_32 = arith.constant 2 : index
    %c0_33 = arith.constant 0 : index
    %41 = vector.load %arg3[%c0_31, %c2_32, %c0_33] : memref<3x3x128xf32, #tpu.memory_space<vmem>>, vector<1x1x128xf32>
    %42 = vector.shape_cast %41 : vector<1x1x128xf32> to vector<128xf32>
    %43 = vector.shape_cast %42 : vector<128xf32> to vector<1x1x128xf32>
    %44 = vector.broadcast %43 : vector<1x1x128xf32> to vector<8x16x128xf32>
    %45 = arith.mulf %40, %44 : vector<8x16x128xf32>
    %46 = arith.addf %37, %45 : vector<8x16x128xf32>
    %c0_i32_34 = arith.constant 0 : i32
    %c0_i32_35 = arith.constant 0 : i32
    %c0_i32_36 = arith.constant 0 : i32
    %47 = tpu.memref_slice %arg8[%0, %c0_i32_34, %c0_i32_35, %c0_i32_36] : memref<2x10x24x128xf32, #tpu.memory_space<vmem>> -> memref<1x10x24x128xf32, #tpu.memory_space<vmem>>
    %48 = tpu.memref_squeeze %47 : memref<1x10x24x128xf32, #tpu.memory_space<vmem>> -> memref<10x24x128xf32, #tpu.memory_space<vmem>>
    %c1_37 = arith.constant 1 : index
    %c0_38 = arith.constant 0 : index
    %c0_39 = arith.constant 0 : index
    %49 = vector.load %48[%c1_37, %c0_38, %c0_39] : memref<10x24x128xf32, #tpu.memory_space<vmem>>, vector<8x16x128xf32>
    %c1_40 = arith.constant 1 : index
    %c0_41 = arith.constant 0 : index
    %c0_42 = arith.constant 0 : index
    %50 = vector.load %arg3[%c1_40, %c0_41, %c0_42] : memref<3x3x128xf32, #tpu.memory_space<vmem>>, vector<1x1x128xf32>
    %51 = vector.shape_cast %50 : vector<1x1x128xf32> to vector<128xf32>
    %52 = vector.shape_cast %51 : vector<128xf32> to vector<1x1x128xf32>
    %53 = vector.broadcast %52 : vector<1x1x128xf32> to vector<8x16x128xf32>
    %54 = arith.mulf %49, %53 : vector<8x16x128xf32>
    %55 = arith.addf %46, %54 : vector<8x16x128xf32>
    %c0_i32_43 = arith.constant 0 : i32
    %c0_i32_44 = arith.constant 0 : i32
    %c0_i32_45 = arith.constant 0 : i32
    %56 = tpu.memref_slice %arg8[%0, %c0_i32_43, %c0_i32_44, %c0_i32_45] : memref<2x10x24x128xf32, #tpu.memory_space<vmem>> -> memref<1x10x24x128xf32, #tpu.memory_space<vmem>>
    %57 = tpu.memref_squeeze %56 : memref<1x10x24x128xf32, #tpu.memory_space<vmem>> -> memref<10x24x128xf32, #tpu.memory_space<vmem>>
    %c1_46 = arith.constant 1 : index
    %c1_47 = arith.constant 1 : index
    %c0_48 = arith.constant 0 : index
    %58 = vector.load %57[%c1_46, %c1_47, %c0_48] : memref<10x24x128xf32, #tpu.memory_space<vmem>>, vector<8x16x128xf32>
    %c1_49 = arith.constant 1 : index
    %c1_50 = arith.constant 1 : index
    %c0_51 = arith.constant 0 : index
    %59 = vector.load %arg3[%c1_49, %c1_50, %c0_51] : memref<3x3x128xf32, #tpu.memory_space<vmem>>, vector<1x1x128xf32>
    %60 = vector.shape_cast %59 : vector<1x1x128xf32> to vector<128xf32>
    %61 = vector.shape_cast %60 : vector<128xf32> to vector<1x1x128xf32>
    %62 = vector.broadcast %61 : vector<1x1x128xf32> to vector<8x16x128xf32>
    %63 = arith.mulf %58, %62 : vector<8x16x128xf32>
    %64 = arith.addf %55, %63 : vector<8x16x128xf32>
    %c0_i32_52 = arith.constant 0 : i32
    %c0_i32_53 = arith.constant 0 : i32
    %c0_i32_54 = arith.constant 0 : i32
    %65 = tpu.memref_slice %arg8[%0, %c0_i32_52, %c0_i32_53, %c0_i32_54] : memref<2x10x24x128xf32, #tpu.memory_space<vmem>> -> memref<1x10x24x128xf32, #tpu.memory_space<vmem>>
    %66 = tpu.memref_squeeze %65 : memref<1x10x24x128xf32, #tpu.memory_space<vmem>> -> memref<10x24x128xf32, #tpu.memory_space<vmem>>
    %c1_55 = arith.constant 1 : index
    %c2_56 = arith.constant 2 : index
    %c0_57 = arith.constant 0 : index
    %67 = vector.load %66[%c1_55, %c2_56, %c0_57] : memref<10x24x128xf32, #tpu.memory_space<vmem>>, vector<8x16x128xf32>
    %c1_58 = arith.constant 1 : index
    %c2_59 = arith.constant 2 : index
    %c0_60 = arith.constant 0 : index
    %68 = vector.load %arg3[%c1_58, %c2_59, %c0_60] : memref<3x3x128xf32, #tpu.memory_space<vmem>>, vector<1x1x128xf32>
    %69 = vector.shape_cast %68 : vector<1x1x128xf32> to vector<128xf32>
    %70 = vector.shape_cast %69 : vector<128xf32> to vector<1x1x128xf32>
    %71 = vector.broadcast %70 : vector<1x1x128xf32> to vector<8x16x128xf32>
    %72 = arith.mulf %67, %71 : vector<8x16x128xf32>
    %73 = arith.addf %64, %72 : vector<8x16x128xf32>
    %c0_i32_61 = arith.constant 0 : i32
    %c0_i32_62 = arith.constant 0 : i32
    %c0_i32_63 = arith.constant 0 : i32
    %74 = tpu.memref_slice %arg8[%0, %c0_i32_61, %c0_i32_62, %c0_i32_63] : memref<2x10x24x128xf32, #tpu.memory_space<vmem>> -> memref<1x10x24x128xf32, #tpu.memory_space<vmem>>
    %75 = tpu.memref_squeeze %74 : memref<1x10x24x128xf32, #tpu.memory_space<vmem>> -> memref<10x24x128xf32, #tpu.memory_space<vmem>>
    %c2_64 = arith.constant 2 : index
    %c0_65 = arith.constant 0 : index
    %c0_66 = arith.constant 0 : index
    %76 = vector.load %75[%c2_64, %c0_65, %c0_66] : memref<10x24x128xf32, #tpu.memory_space<vmem>>, vector<8x16x128xf32>
    %c2_67 = arith.constant 2 : index
    %c0_68 = arith.constant 0 : index
    %c0_69 = arith.constant 0 : index
    %77 = vector.load %arg3[%c2_67, %c0_68, %c0_69] : memref<3x3x128xf32, #tpu.memory_space<vmem>>, vector<1x1x128xf32>
    %78 = vector.shape_cast %77 : vector<1x1x128xf32> to vector<128xf32>
    %79 = vector.shape_cast %78 : vector<128xf32> to vector<1x1x128xf32>
    %80 = vector.broadcast %79 : vector<1x1x128xf32> to vector<8x16x128xf32>
    %81 = arith.mulf %76, %80 : vector<8x16x128xf32>
    %82 = arith.addf %73, %81 : vector<8x16x128xf32>
    %c0_i32_70 = arith.constant 0 : i32
    %c0_i32_71 = arith.constant 0 : i32
    %c0_i32_72 = arith.constant 0 : i32
    %83 = tpu.memref_slice %arg8[%0, %c0_i32_70, %c0_i32_71, %c0_i32_72] : memref<2x10x24x128xf32, #tpu.memory_space<vmem>> -> memref<1x10x24x128xf32, #tpu.memory_space<vmem>>
    %84 = tpu.memref_squeeze %83 : memref<1x10x24x128xf32, #tpu.memory_space<vmem>> -> memref<10x24x128xf32, #tpu.memory_space<vmem>>
    %c2_73 = arith.constant 2 : index
    %c1_74 = arith.constant 1 : index
    %c0_75 = arith.constant 0 : index
    %85 = vector.load %84[%c2_73, %c1_74, %c0_75] : memref<10x24x128xf32, #tpu.memory_space<vmem>>, vector<8x16x128xf32>
    %c2_76 = arith.constant 2 : index
    %c1_77 = arith.constant 1 : index
    %c0_78 = arith.constant 0 : index
    %86 = vector.load %arg3[%c2_76, %c1_77, %c0_78] : memref<3x3x128xf32, #tpu.memory_space<vmem>>, vector<1x1x128xf32>
    %87 = vector.shape_cast %86 : vector<1x1x128xf32> to vector<128xf32>
    %88 = vector.shape_cast %87 : vector<128xf32> to vector<1x1x128xf32>
    %89 = vector.broadcast %88 : vector<1x1x128xf32> to vector<8x16x128xf32>
    %90 = arith.mulf %85, %89 : vector<8x16x128xf32>
    %91 = arith.addf %82, %90 : vector<8x16x128xf32>
    %c0_i32_79 = arith.constant 0 : i32
    %c0_i32_80 = arith.constant 0 : i32
    %c0_i32_81 = arith.constant 0 : i32
    %92 = tpu.memref_slice %arg8[%0, %c0_i32_79, %c0_i32_80, %c0_i32_81] : memref<2x10x24x128xf32, #tpu.memory_space<vmem>> -> memref<1x10x24x128xf32, #tpu.memory_space<vmem>>
    %93 = tpu.memref_squeeze %92 : memref<1x10x24x128xf32, #tpu.memory_space<vmem>> -> memref<10x24x128xf32, #tpu.memory_space<vmem>>
    %c2_82 = arith.constant 2 : index
    %c2_83 = arith.constant 2 : index
    %c0_84 = arith.constant 0 : index
    %94 = vector.load %93[%c2_82, %c2_83, %c0_84] : memref<10x24x128xf32, #tpu.memory_space<vmem>>, vector<8x16x128xf32>
    %c2_85 = arith.constant 2 : index
    %c2_86 = arith.constant 2 : index
    %c0_87 = arith.constant 0 : index
    %95 = vector.load %arg3[%c2_85, %c2_86, %c0_87] : memref<3x3x128xf32, #tpu.memory_space<vmem>>, vector<1x1x128xf32>
    %96 = vector.shape_cast %95 : vector<1x1x128xf32> to vector<128xf32>
    %97 = vector.shape_cast %96 : vector<128xf32> to vector<1x1x128xf32>
    %98 = vector.broadcast %97 : vector<1x1x128xf32> to vector<8x16x128xf32>
    %99 = arith.mulf %94, %98 : vector<8x16x128xf32>
    %100 = arith.addf %91, %99 : vector<8x16x128xf32>
    %101 = vector.shape_cast %100 : vector<8x16x128xf32> to vector<128x128xf32>
    %c0_88 = arith.constant 0 : index
    %c0_89 = arith.constant 0 : index
    %102 = vector.load %arg5[%c0_88, %c0_89] : memref<128x128xf32, #tpu.memory_space<vmem>>, vector<128x128xf32>
    %cst = arith.constant dense<0.000000e+00> : vector<128x128xf32>
    %103 = tpu.matmul %101, %102, %cst {dimension_numbers = #tpu.dot_dimension_numbers<[1], [0], [0], [1], [0, 0, 1, 1], [], []>} : vector<128x128xf32>, vector<128x128xf32>, vector<128x128xf32> -> vector<128x128xf32>
    %c0_90 = arith.constant 0 : index
    %c0_91 = arith.constant 0 : index
    %104 = vector.load %arg6[%c0_90, %c0_91] : memref<1x128xf32, #tpu.memory_space<vmem>>, vector<1x128xf32>
    %105 = vector.shape_cast %104 : vector<1x128xf32> to vector<128xf32>
    %106 = vector.shape_cast %105 : vector<128xf32> to vector<1x128xf32>
    %107 = vector.broadcast %106 : vector<1x128xf32> to vector<128x128xf32>
    %108 = arith.addf %103, %107 : vector<128x128xf32>
    %109 = vector.shape_cast %108 : vector<128x128xf32> to vector<8x16x128xf32>
    %c0_92 = arith.constant 0 : index
    %c0_93 = arith.constant 0 : index
    %c0_94 = arith.constant 0 : index
    %c0_95 = arith.constant 0 : index
    %110 = vector.load %arg7[%c0_92, %c0_93, %c0_94, %c0_95] : memref<1x8x16x128xf32, #tpu.memory_space<vmem>>, vector<1x8x16x128xf32>
    %111 = vector.shape_cast %110 : vector<1x8x16x128xf32> to vector<8x16x128xf32>
    %112 = vector.shape_cast %109 : vector<8x16x128xf32> to vector<1x8x16x128xf32>
    tpu.vector_store %arg7[%c0_92, %c0_93, %c0_94, %c0_95], %112 {strides = array<i32>} : memref<1x8x16x128xf32, #tpu.memory_space<vmem>>, vector<1x8x16x128xf32>,
    return
  }
  func.func @transform_1(%arg0: i32, %arg1: i32) -> (i32, i32, i32) {
    %c0_i32 = arith.constant 0 : i32
    %c0_i32_0 = arith.constant 0 : i32
    %c0_i32_1 = arith.constant 0 : i32
    %c0_i32_2 = arith.constant 0 : i32
    return %c0_i32, %c0_i32_0, %c0_i32_1 : i32, i32, i32
  }
  func.func @transform_2(%arg0: i32, %arg1: i32) -> (i32, i32) {
    %c0_i32 = arith.constant 0 : i32
    %c0_i32_0 = arith.constant 0 : i32
    %c0_i32_1 = arith.constant 0 : i32
    return %c0_i32, %c0_i32_0 : i32, i32
  }
  func.func @transform_3(%arg0: i32, %arg1: i32) -> (i32, i32) {
    %c0_i32 = arith.constant 0 : i32
    %c0_i32_0 = arith.constant 0 : i32
    %c0_i32_1 = arith.constant 0 : i32
    return %c0_i32, %c0_i32_0 : i32, i32
  }
  func.func @transform_4(%arg0: i32, %arg1: i32) -> (i32, i32) {
    %c0_i32 = arith.constant 0 : i32
    %c0_i32_0 = arith.constant 0 : i32
    %c0_i32_1 = arith.constant 0 : i32
    return %c0_i32, %c0_i32_0 : i32, i32
  }
  func.func @transform_5(%arg0: i32, %arg1: i32) -> (i32, i32, i32, i32) {
    %c0_i32 = arith.constant 0 : i32
    %c0_i32_0 = arith.constant 0 : i32
    %c0_i32_1 = arith.constant 0 : i32
    return %arg0, %arg1, %c0_i32, %c0_i32_0 : i32, i32, i32, i32
  }
}

</mosaic_0001>

<bundles_post_ra>
// kernel: tpu_custom_call.1
= control target key start
LH: loop header
LB: loop body
LE: loop exit
PB: predicated region body
PF: predicated region fallthrough
CT: control target
= control target key end

     0   :  { %s2200_s0 = inlined_call_operand.hbm [shape: f32[2,18,24,128], index: 0, kind: input, shape index: {}]   ;;  %s2201_s1 = inlined_call_operand.hbm [shape: f32[3,3,128], index: 1, kind: input, shape index: {}]   ;;  %s2202_s2 = inlined_call_operand.vmem [shape: f32[1,128], index: 2, kind: input, shape index: {}]   ;;  %s2203_s3 = inlined_call_operand.hbm [shape: f32[128,128], index: 3, kind: input, shape index: {}]   ;;  %s2204_s4 = inlined_call_operand.vmem [shape: f32[1,128], index: 4, kind: input, shape index: {}]   ;;  %s2205_s5 = inlined_call_operand.hbm [shape: f32[2,16,16,128], index: 5, kind: output, shape index: {}]  }
   0x1   :  { %2239 = sst [smem:[#allocation44_spill]] %s2201_s1 }
   0x2   :  { %10 = vsyncpa [#allocation5], 0 }
   0x3   :  { %11 = vsyncpa [#allocation8], 0 }
   0x4   :  { %12 = vsyncpa [#allocation6], 0 }
   0x5   :  { %14 = vsyncpa [#allocation6 + $0x1], 0  ;;  %s1515_s18 = smov 0   ;;  %s1517_s19 = smov 0  }
   0x6   :  { %s1519_s20 = smov 0   ;;  %s1521_s21 = smov 0  }
   0x7   :  { %s1523_s22 = smov 0   ;;  %s1525_s23 = smov 0  }
   0x8   :  { %s1527_s24 = smov 0   ;;  %s1529_s25 = smov 0  }
   0x9 LB: > { %2240 = sst [smem:[#allocation20_spill]] %s1470_s24  ;;  %s973_s26 = sadd.s32 4294967295, %s1474_s25   ;;  %s1474_s25 = sphi %s1529_s25, %s20_s25   ;;  %s1470_s24 = sphi %s1527_s24, %s2294_s24   ;;  %s1466_s23 = sphi %s1525_s23, %s2299_s23   ;;  %s1462_s22 = sphi %s1523_s22, %s2292_s22   ;;  %s1458_s21 = sphi %s1521_s21, %s2298_s21   ;;  %s1454_s20 = sphi %s1519_s20, %s2297_s20   ;;  %s1450_s19 = sphi %s1517_s19, %s2296_s19   ;;  %s1446_s18 = sphi %s1515_s18, %s2295_s18  }
   0xa   : > { %s974_s27 = sadd.s32 4294967294, %s1474_s25   ;;  %s29_s28 = sadd.s32 1, %s1466_s23 }
   0xb   : > { %s32_s29 = sadd.s32 1, %s1470_s24  ;;  %p30_p0 = scmp.ge.s32.totalorder %s29_s28, 2 }
   0xc   : > { %s125_s30 = sadd.s32 1, %s1454_s20  ;;  %p135_p1 = scmp.ne.s32.totalorder %s1454_s20, %s1450_s19 }
   0xd   : > { %p136_p2 = scmp.eq.s32.totalorder %s973_s26, 3  ;;  %s2301_s28 = smov (%p30_p0, %s29_s28), 0 }
   0xe   : > { %2241 = sst [smem:[#allocation21_spill]] %s2301_s28  ;;  %s2303_s29 = smov (!%p30_p0, %s32_s29), %s1470_s24 }
   0xf   : > { %s121_s6 = ssub.s32 %s1466_s23, %s2301_s28  ;;  %p1567_p3 = por %p136_p2, %p135_p1 }
  0x10   : > { %p34_p4 = scmp.ge.s32.totalorder %s2303_s29, 2  ;;  %p141_p5 = scmp.ne.s32.totalorder %s1450_s19, %s1446_s18 }
  0x11   : > { %p142_p6 = scmp.eq.s32.totalorder %s974_s27, 3  ;;  %p975_p7 = scmp.ge.s32.totalorder %s1474_s25, 1 }
  0x12   : > { %s2305_s29 = smov (%p34_p4, %s2303_s29), 0  ;;  %p149_p9 = scmp.lt.s32.totalorder %s1474_s25, 5 }
  0x13   : > { %2243 = sst [smem:[#allocation22_spill]] %s2305_s29  ;;  %p1576_p8 = por %p142_p6, %p141_p5 }
  0x14   : > { %s120_s9 = ssub.s32 %s1470_s24, %s2305_s29  ;;  %p1583_p10 = pnand %p975_p7, %p149_p9 }
  0x15   : > { %s122_s10 = sor.u32 %s121_s6, %s120_s9  ;;  %p1587_p12 = scmp.eq.s32.totalorder %s973_s26, 0 }
  0x16   : > { %p123_p11 = scmp.eq.s32.totalorder %s122_s10, 0  ;;  %p1152_p13 = pneg %p1583_p10 }
  0x17   : > { %s2247_s1 = sld [smem:[#allocation44_spill]]  ;;  %s1476_s17 = smov [#allocation4]  }
  0x18   : > { %s1597_s16 = scalar_select %p123_p11, %s1454_s20, %s125_s30  }
  0x19   : > { %s162_s27 = sshll.u32 %s1476_s17, 4  ;;  %p1153_p0 = pnand %p1587_p12, %p1152_p13  ;;  %s163_s27 = int_to_ptr.vmem [resolvable:$true] %s162_s27 }
  0x1a   : > { %s1477_s6 = smov 64   ;;  %s1478_s26 = smov 4  }
  0x1b   : > { %s177_s29 = sshll.u32 %s2203_s3, 4  ;;  %s1479_s28 = smov [#allocation7]   ;;  %s178_s29 = int_to_ptr.hbm [resolvable:$true] %s177_s29 }
  0x1c   : > { %s179_s24 = sshll.u32 %s1479_s28, 4  ;;  %s1480_s13 = smov 128   ;;  %s180_s24 = int_to_ptr.vmem [resolvable:$true] %s179_s24 }
  0x1d   : > { %s160_s15 = sshll.u32 %s2247_s1, 4  ;;  %s1481_s30 = smov 8   ;;  %s161_s15 = int_to_ptr.hbm [resolvable:$true] %s160_s15 }
  0x1e   : > { %1155 = dma.hbm_to_vmem [thread:$0]  (!%p1153_p0), %s161_s15, 192, %s163_s27, [#allocation5], %s1477_s6, %s1477_s6, %s1478_s26  }
  0x1f   : > { %1158 = dma.hbm_to_vmem [thread:$0]  (!%p1153_p0), %s178_s29, 2048, %s180_s24, [#allocation8], %s1480_s13, %s1480_s13, %s1481_s30  }
  0x20   : > { %198 = sbr.rel (%p1583_p10) target bundleno = 306 (0x132), region = 36 }
  0x25   : > { %1431 = dma.done.wait (%p1587_p12), [#allocation5], 192  }
  0x26   : > { %1433 = vsyncadd (%p1587_p12), [#allocation5], 4294967104 }
  0x27   : > { %1435 = dma.done.wait (%p1587_p12), [#allocation8], 2048  }
  0x28   : > { %1437 = vsyncadd (%p1587_p12), [#allocation8], 4294965248  ;;  %s2209_s24 = sand.u32 1, %s1450_s19   ;;  %p1167_p1 = scmp.eq.s32.totalorder %s1458_s21, 0 }
  0x29   : > { %s1617_s28 = sshll.u32 %s2209_s24, 7  ;;  %s232_s29 = smul.u32 432, %s1462_s22 }
  0x2a   : > { %s907_s11 = smul.u32 192, %s1458_s21  ;;  %s1482_s27 = smov [#allocation2]  }
  0x2b   : > { %s234_s17 = scalar_lea.hbm %s2200_s0, %s232_s29  ;;  %s244_s12 = sshll.u32 %s1482_s27, 4  ;;  %s245_s12 = int_to_ptr.vmem [resolvable:$true] %s244_s12 }
  0x2c   : > { %s242_s6 = sshll.u32 %s234_s17, 4  ;;  %s909_s26 = sadd.s32 %s907_s11, %s232_s29  ;;  %s243_s6 = int_to_ptr.hbm [resolvable:$true] %s242_s6 }
  0x2d   : > { %s1314_s9 = sshra.s32 %s243_s6, 4  ;;  %s1320_s24 = scalar_lea.hbm %s2200_s0, 864  ;;  %s1315_s9 = int_to_ptr.hbm [resolvable:$true] %s1314_s9 }
  0x2e   : > { %s1316_s10 = scalar_lea.hbm %s1315_s9, 240  ;;  %p1321_p6 = scmp.lt.s32.totalorder %s1315_s9, %s2200_s0 }
  0x2f   : > { %p1317_p2 = scmp.ne.s32.totalorder %s1315_s9, %s1316_s10  ;;  %p1322_p7 = scmp.lt.s32.totalorder %s1320_s24, %s1316_s10 }
  0x31   : > { %p1318_p4 = pnand %p1317_p2, %p1167_p1  ;;  %p1323_p9 = por %p1322_p7, %p1321_p6 }
  0x33   : > { %p1319_p5 = pneg %p1318_p4 }
  0x35   : > { %p1324_p10 = pnand %p1323_p9, %p1319_p5 }
  0x37   : > { %1327 = shalt.err (!%p1324_p10)  }
  0x38   : > { %1147 = dma.hbm_to_vmem [thread:$0]  (%p1167_p1), %s243_s6, 3840, %s245_s12, [#allocation3] }
  0x39   : > { %s910_s15 = scalar_lea.hbm %s2200_s0, %s909_s26  ;;  %s1639_s17 = sand.u32 1, %s1458_s21 }
  0x3a   : > { %s911_s27 = scalar_lea.hbm %s910_s15, 192  ;;  %s248_s1 = sadd.s32 1, %s1458_s21 }
  0x3b   : > { %p1642_p11 = scmp.lt.s32.totalorder %s248_s1, 2  ;;  %s253_s10 = ssub.s32 1, %s1639_s17 }
  0x3c   : > { %s269_s13 = sshll.u32 %s911_s27, 4  ;;  %s259_s30 = smul.u32 240, %s253_s10  ;;  %s270_s13 = int_to_ptr.hbm [resolvable:$true] %s269_s13 }
  0x3d   : > { %s276_s12 = smul.u32 240, %s1639_s17  ;;  %s261_s26 = scalar_lea.sflag [#allocation3], %s253_s10 }
  0x3e   : > { %s260_s6 = scalar_lea.vmem [#allocation2], %s259_s30  ;;  %s1342_s29 = sshra.s32 %s270_s13, 4  ;;  %s1343_s29 = int_to_ptr.hbm [resolvable:$true] %s1342_s29 }
  0x3f   : > { %s271_s14 = sshll.u32 %s260_s6, 4  ;;  %s1344_s11 = scalar_lea.hbm %s1343_s29, 240  ;;  %s272_s14 = int_to_ptr.vmem [resolvable:$true] %s271_s14 }
  0x40   : > { %p1345_p12 = scmp.ne.s32.totalorder %s1343_s29, %s1344_s11  ;;  %p1349_p1 = scmp.lt.s32.totalorder %s1343_s29, %s2200_s0 }
  0x41   : > { %p1350_p2 = scmp.lt.s32.totalorder %s1320_s24, %s1344_s11 }
  0x42   : > { %p1346_p13 = pnand %p1345_p12, %p1642_p11 }
  0x43   : > { %p1351_p4 = por %p1350_p2, %p1349_p1 }
  0x44   : > { %p1347_p0 = pneg %p1346_p13 }
  0x46   : > { %p1352_p5 = pnand %p1351_p4, %p1347_p0 }
  0x48   : > { %1355 = shalt.err (!%p1352_p5)  }
  0x49   : > { %1149 = dma.hbm_to_vmem [thread:$0]  (%p1642_p11), %s270_s13, 3840, %s272_s14, %s261_s26 }
  0x4a   : > { %s1656_s27 = scalar_lea.vmem [#allocation9], %s1617_s28  ;;  %s1658_s10 = scalar_lea.vmem [#allocation2], %s276_s12 }
  0x4b   : > { %s278_s30 = scalar_lea.sflag [#allocation3], %s1639_s17 }
  0x4c   : > { %1438 = dma.done.wait %s278_s30, 3840 }
  0x4d   : > { %1439 = vsyncadd %s278_s30, 4294963456  ;;  %v756_v0 = vld [vmem:[#allocation7 + $0x78] sm:$0xff]  ;;  %v755_v1 = vld [vmem:[#allocation7 + $0x70] sm:$0xff]  ;;  %s1089_s13 = sshll.u32 %s1458_s21, 4  ;;  %s1083_s12 = sshll.u32 %s1462_s22, 5 }
  0x4e   : > { %1091 = vmatpush.msra.mxu2 %v756_v0  ;;  %1092 = vmatpush.msra.mxu3 %v756_v0  ;;  %v754_v2 = vld [vmem:[#allocation7 + $0x68] sm:$0xff]  ;;  %v753_v3 = vld [vmem:[#allocation7 + $0x60] sm:$0xff]  ;;  %v752_v4 = vld [vmem:[#allocation7 + $0x58] sm:$0xff]  ;;  %s855_s6 = sadd.s32 %s1089_s13, %s1083_s12  ;;  %s858_s15 = sshll.u32 %s1656_s27, 4  ;;  %s859_s15 = int_to_ptr.vmem [resolvable:$true] %s858_s15 }
  0x4f   : > { %761 = vmatpush.msra.mxu0 %v756_v0  ;;  %1090 = vmatpush.msra.mxu1 %v756_v0  ;;  %v1664_v5 = vld [vmem:[%s2202_s2] ss:$0 sm:$0xff]  ;;  %v1672_v9 = vld [vmem:[%s1658_s10 + $0x61] sm:$0xff]  ;;  %v1686_v16 = vld [vmem:[%s1658_s10 + $0x78] sm:$0xff]  ;;  %s1084_s14 = sshll.u32 %s855_s6, 3  ;;  %s2291_s21 = sand.u32 1, %s1450_s19  }
  0x50   : > { %1094 = vmatpush.msra.mxu2 %v755_v1  ;;  %1095 = vmatpush.msra.mxu3 %v755_v1  ;;  %v751_v6 = vld [vmem:[#allocation7 + $0x50] sm:$0xff]  ;;  %2250 = vst [vmem:[#allocation24_spill] sm:$0xff] %v1672_v9  ;;  %v750_v11 = vld [vmem:[#allocation7 + $0x48] sm:$0xff]  ;;  %v1688_v17 = vld [vmem:[#allocation4 + $0x4] ss:$0 sm:$0xff]  ;;  %s857_s11 = scalar_lea.hbm %s2205_s5, %s1084_s14  ;;  %s843_s22 = scalar_lea.sflag [#allocation6], %s2291_s21 }
  0x51   : > { %762 = vmatpush.msra.mxu0 %v755_v1  ;;  %1093 = vmatpush.msra.mxu1 %v755_v1  ;;  %v1667_v7 = vld [vmem:[%s1658_s10 + $0x60] sm:$0xff]  ;;  %v465_v27 = vmul.f32 %v1688_v17, %v1686_v16  ;;  %v1706_v28 = vld [vmem:[%s1658_s10 + $0x90] sm:$0xff]  ;;  %v1708_v29 = vld [vmem:[#allocation4 + $0x8] ss:$0 sm:$0xff]  ;;  %s860_s1 = sshll.u32 %s857_s11, 4  ;;  %s1390_s17 = scalar_lea.hbm %s2205_s5, 512  ;;  %s861_s1 = int_to_ptr.hbm [resolvable:$true] %s860_s1 }
  0x52   : > { %1097 = vmatpush.msra.mxu2 %v754_v2  ;;  %1098 = vmatpush.msra.mxu3 %v754_v2  ;;  %2249 = vst [vmem:[#allocation23_spill] sm:$0xff] %v1667_v7  ;;  %v1669_v8 = vld [vmem:[#allocation4] ss:$0 sm:$0xff]  ;;  %v1674_v10 = vld [vmem:[#allocation4 + $0x1] ss:$0 sm:$0xff]  ;;  %v1679_v13 = vld [vmem:[%s1658_s10 + $0x62] sm:$0xff]  ;;  %v617_v45 = vmul.f32 %v1708_v29, %v1706_v28 }
  0x53   : > { %763 = vmatpush.msra.mxu0 %v754_v2  ;;  %1096 = vmatpush.msra.mxu1 %v754_v2  ;;  %v313_v12 = vmul.f32 %v1669_v8, %v1667_v7  ;;  %2251 = vst [vmem:[#allocation25_spill] sm:$0xff] %v1679_v13  ;;  %v1681_v14 = vld [vmem:[#allocation4 + $0x2] ss:$0 sm:$0xff]  ;;  %v363_v15 = vmul.f32 %v1674_v10, %v1672_v9  ;;  %v749_v18 = vld [vmem:[#allocation7 + $0x40] sm:$0xff]  ;;  %v1696_v22 = vld [vmem:[#allocation4 + $0x5] ss:$0 sm:$0xff] }
  0x54   : > { %1100 = vmatpush.msra.mxu2 %v753_v3  ;;  %1101 = vmatpush.msra.mxu3 %v753_v3  ;;  %v413_v20 = vmul.f32 %v1681_v14, %v1679_v13  ;;  %v1694_v21 = vld [vmem:[%s1658_s10 + $0x79] sm:$0xff]  ;;  %v1701_v24 = vld [vmem:[#allocation4 + $0x6] ss:$0 sm:$0xff]  ;;  %v317_v32 = vmul.f32 %v1669_v8, %v1706_v28  ;;  %v1730_v40 = vld [vmem:[%s1658_s10 + $0xa8] sm:$0xff] }
  0x55   : > { %764 = vmatpush.msra.mxu0 %v753_v3  ;;  %1099 = vmatpush.msra.mxu1 %v753_v3  ;;  %v329_v19 = vadd.f32 %v1664_v5, %v313_v12  ;;  %v1699_v23 = vld [vmem:[%s1658_s10 + $0x7a] sm:$0xff]  ;;  %v1711_v30 = vld [vmem:[%s1658_s10 + $0x91] sm:$0xff]  ;;  %v1713_v31 = vld [vmem:[#allocation4 + $0x9] ss:$0 sm:$0xff]  ;;  %v515_v34 = vmul.f32 %v1696_v22, %v1694_v21  ;;  %v469_v47 = vmul.f32 %v1688_v17, %v1730_v40 }
  0x56   : > { %1103 = vmatpush.msra.mxu2 %v752_v4  ;;  %1104 = vmatpush.msra.mxu3 %v752_v4  ;;  %v748_v25 = vld [vmem:[#allocation7 + $0x38] sm:$0xff]  ;;  %v367_v37 = vmul.f32 %v1674_v10, %v1711_v30  ;;  %v333_v38 = vadd.f32 %v1664_v5, %v317_v32  ;;  %v747_v41 = vld [vmem:[#allocation7 + $0x30] sm:$0xff]  ;;  %v565_v43 = vmul.f32 %v1701_v24, %v1699_v23  ;;  %v746_v51 = vld [vmem:[#allocation7 + $0x28] sm:$0xff] }
  0x57   : > { %765 = vmatpush.msra.mxu0 %v752_v4  ;;  %1102 = vmatpush.msra.mxu1 %v752_v4  ;;  %v379_v26 = vadd.f32 %v363_v15, %v329_v19  ;;  %v1720_v35 = vld [vmem:[%s1658_s10 + $0x92] sm:$0xff]  ;;  %v1722_v36 = vld [vmem:[#allocation4 + $0xa] ss:$0 sm:$0xff]  ;;  %v287_v49 = vld [vmem:[%s1658_s10] sm:$0xff]  ;;  %v667_v53 = vmul.f32 %v1713_v31, %v1711_v30 }
  0x58   : > { %1106 = vmatpush.msra.mxu2 %v751_v6  ;;  %1107 = vmatpush.msra.mxu3 %v751_v6  ;;  %v417_v39 = vmul.f32 %v1681_v14, %v1720_v35  ;;  %v1735_v44 = vld [vmem:[%s1658_s10 + $0xa9] sm:$0xff]  ;;  %v383_v46 = vadd.f32 %v367_v37, %v333_v38  ;;  %v337_v50 = vld [vmem:[%s1658_s10 + $0x1] sm:$0xff]  ;;  %v1750_v54 = vmul.f32 %v1722_v36, %v1720_v35  ;;  %v1766_v1 = vld [vmem:[%s1658_s10 + $0x18] sm:$0xff] }
  0x59   : > { %766 = vmatpush.msra.mxu0 %v751_v6  ;;  %1105 = vmatpush.msra.mxu1 %v751_v6  ;;  %v429_v33 = vadd.f32 %v413_v20, %v379_v26  ;;  %v1742_v48 = vld [vmem:[%s1658_s10 + $0xaa] sm:$0xff]  ;;  %v387_v55 = vld [vmem:[%s1658_s10 + $0x2] sm:$0xff]  ;;  %v519_v57 = vmul.f32 %v1696_v22, %v1735_v44  ;;  %v305_v60 = vmul.f32 %v1669_v8, %v287_v49  ;;  %v1786_v32 = vld [vmem:[%s1658_s10 + $0x1a] sm:$0xff] }
  0x5a   : > { %1109 = vmatpush.msra.mxu2 %v750_v11  ;;  %1110 = vmatpush.msra.mxu3 %v750_v11  ;;  %v433_v56 = vadd.f32 %v417_v39, %v383_v46  ;;  %v1756_v58 = vld [vmem:[%s1658_s10 + $0xc0] sm:$0xff]  ;;  %v569_v63 = vmul.f32 %v1701_v24, %v1742_v48  ;;  %v355_v0 = vmul.f32 %v1674_v10, %v337_v50  ;;  %v1781_v20 = vld [vmem:[%s1658_s10 + $0x30] sm:$0xff]  ;;  %v1801_v46 = vld [vmem:[%s1658_s10 + $0x48] sm:$0xff] }
  0x5b   : > { %767 = vmatpush.msra.mxu0 %v750_v11  ;;  %1108 = vmatpush.msra.mxu1 %v750_v11  ;;  %v481_v42 = vadd.f32 %v465_v27, %v429_v33  ;;  %v1759_v59 = vld [vmem:[%s1658_s10 + $0xc1] sm:$0xff]  ;;  %v321_v4 = vadd.f32 %v1664_v5, %v305_v60  ;;  %v405_v6 = vmul.f32 %v1681_v14, %v387_v55  ;;  %v1774_v11 = vld [vmem:[%s1658_s10 + $0x19] sm:$0xff]  ;;  %v1789_v33 = vld [vmem:[%s1658_s10 + $0x31] sm:$0xff] }
  0x5c   : > { %1112 = vmatpush.msra.mxu2 %v749_v18  ;;  %1113 = vmatpush.msra.mxu3 %v749_v18  ;;  %v745_v61 = vld [vmem:[#allocation7 + $0x20] sm:$0xff]  ;;  %v485_v2 = vadd.f32 %v469_v47, %v433_v56  ;;  %v744_v12 = vld [vmem:[#allocation7 + $0x18] sm:$0xff]  ;;  %v671_v19 = vmul.f32 %v1713_v31, %v1759_v59  ;;  %v457_v27 = vmul.f32 %v1688_v17, %v1766_v1  ;;  %v743_v37 = vld [vmem:[#allocation7 + $0x10] sm:$0xff] }
  0x5d   : > { %768 = vmatpush.msra.mxu0 %v749_v18  ;;  %1111 = vmatpush.msra.mxu1 %v749_v18  ;;  %v531_v52 = vadd.f32 %v515_v34, %v481_v42  ;;  %v1769_v3 = vld [vmem:[%s1658_s10 + $0xc2] sm:$0xff]  ;;  %v621_v18 = vmul.f32 %v1708_v29, %v1756_v58  ;;  %v371_v26 = vadd.f32 %v355_v0, %v321_v4  ;;  %v1792_v34 = vld [vmem:[%s1658_s10 + $0x32] sm:$0xff] }
  0x5e   : > { %1115 = vmatpush.msra.mxu2 %v748_v25  ;;  %1116 = vmatpush.msra.mxu3 %v748_v25  ;;  %2252 = vst [vmem:[#allocation26_spill] sm:$0xff] %v1792_v34  ;;  %v721_v39 = vmul.f32 %v1722_v36, %v1769_v3  ;;  %v742_v47 = vld [vmem:[#allocation7 + $0x8] sm:$0xff]  ;;  %v557_v49 = vmul.f32 %v1701_v24, %v1786_v32 }
  0x5f   : > { %769 = vmatpush.msra.mxu0 %v748_v25  ;;  %1114 = vmatpush.msra.mxu1 %v748_v25  ;;  %v581_v62 = vadd.f32 %v565_v43, %v531_v52  ;;  %v535_v25 = vadd.f32 %v519_v57, %v485_v2  ;;  %v421_v43 = vadd.f32 %v405_v6, %v371_v26  ;;  %v1811_v56 = vld [vmem:[%s1658_s10 + $0x49] sm:$0xff] }
  0x60   : > { %1118 = vmatpush.msra.mxu2 %v747_v41  ;;  %1119 = vmatpush.msra.mxu3 %v747_v41  ;;  %v359_v50 = vmul.f32 %v1674_v10, %v1789_v33  ;;  %v741_v57 = vld [vmem:[#allocation7] sm:$0xff] }
  0x61   : > { %770 = vmatpush.msra.mxu0 %v747_v41  ;;  %1117 = vmatpush.msra.mxu1 %v747_v41  ;;  %v633_v15 = vadd.f32 %v617_v45, %v581_v62  ;;  %v507_v41 = vmul.f32 %v1696_v22, %v1774_v11  ;;  %v585_v42 = vadd.f32 %v569_v63, %v535_v25  ;;  %v1819_v4 = vld [vmem:[%s1658_s10 + $0x68] sm:$0xff] }
  0x62   : > { %1121 = vmatpush.msra.mxu2 %v746_v51  ;;  %1122 = vmatpush.msra.mxu3 %v746_v51  ;;  %v309_v45 = vmul.f32 %v1669_v8, %v1781_v20  ;;  %v461_v62 = vmul.f32 %v1688_v17, %v1801_v46  ;;  %v1822_v6 = vld [vmem:[%s1658_s10 + $0x69] sm:$0xff] }
  0x63   : > { %771 = vmatpush.msra.mxu0 %v746_v51  ;;  %1120 = vmatpush.msra.mxu1 %v746_v51  ;;  %v683_v38 = vadd.f32 %v667_v53, %v633_v15  ;;  %v409_v51 = vmul.f32 %v1681_v14, %v1792_v34  ;;  %v637_v52 = vadd.f32 %v621_v18, %v585_v42  ;;  %v1829_v15 = vld [vmem:[%s1658_s10 + $0x4a] sm:$0xff] }
  0x64   : > { %1124 = vmatpush.msra.mxu2 %v745_v61  ;;  %1125 = vmatpush.msra.mxu3 %v745_v61  ;;  %v473_v53 = vadd.f32 %v457_v27, %v421_v43  ;;  %v325_v55 = vadd.f32 %v1664_v5, %v309_v45  ;;  %v1832_v26 = vld [vmem:[%s1658_s10 + $0x6a] sm:$0xff]  ;;  %v709_v27 = vmul.f32 %v1722_v36, %v1792_v34  ;;  %v1843_v43 = vld [vmem:[%s1658_s10 + $0x80] sm:$0xff]  ;;  %v1846_v45 = vld [vmem:[%s1658_s10 + $0x98] sm:$0xff] }
  0x65   : > { %772 = vmatpush.msra.mxu0 %v745_v61  ;;  %1123 = vmatpush.msra.mxu1 %v745_v61  ;;  %v733_v60 = vadd.f32 %v1750_v54, %v683_v38  ;;  %v609_v61 = vmul.f32 %v1708_v29, %v1781_v20  ;;  %v687_v63 = vadd.f32 %v671_v19, %v637_v52  ;;  %v1958_v34 = vld [vmem:[%s1658_s10 + $0x51] sm:$0xff] }
  0x66   : > { %1127 = vmatpush.msra.mxu2 %v744_v12  ;;  %1128 = vmatpush.msra.mxu3 %v744_v12  ;;  %v523_v0 = vadd.f32 %v507_v41, %v473_v53  ;;  %v375_v2 = vadd.f32 %v359_v50, %v325_v55  ;;  %v659_v54 = vmul.f32 %v1713_v31, %v1789_v33 }
  0x67   : > { %773 = vmatpush.msra.mxu0 %v744_v12  ;;  %1126 = vmatpush.msra.mxu1 %v744_v12  ;;  %v511_v12 = vmul.f32 %v1696_v22, %v1811_v56  ;;  %v737_v18 = vadd.f32 %v721_v39, %v687_v63  ;;  %v364_v38 = vmul.f32 %v1674_v10, %v1822_v6 }
  0x68   : > { %1130 = vmatpush.msra.mxu2 %v743_v37  ;;  %1131 = vmatpush.msra.mxu3 %v743_v37  ;;  %v573_v19 = vadd.f32 %v557_v49, %v523_v0  ;;  %v425_v25 = vadd.f32 %v409_v51, %v375_v2  ;;  %v561_v42 = vmul.f32 %v1701_v24, %v1829_v15  ;;  %v1855_v51 = vld [vmem:[%s1658_s10 + $0x81] sm:$0xff] }
  0x69   : > { %774 = vmatpush.msra.mxu0 %v743_v37  ;;  %1129 = vmatpush.msra.mxu1 %v743_v37  ;;  %v314_v37 = vmul.f32 %v1669_v8, %v1819_v4  ;;  %2253 = vst [vmem:[#allocation27_spill] sm:$0xff] %v1843_v43  ;;  %v414_v50 = vmul.f32 %v1681_v14, %v1832_v26 }
  0x6a   : > { %1133 = vmatpush.msra.mxu2 %v742_v47  ;;  %1134 = vmatpush.msra.mxu3 %v742_v47  ;;  %v625_v39 = vadd.f32 %v609_v61, %v573_v19  ;;  %v477_v41 = vadd.f32 %v461_v62, %v425_v25  ;;  %2254 = vst [vmem:[#allocation28_spill] sm:$0xff] %v1846_v45  ;;  %v1865_v61 = vld [vmem:[%s1658_s10 + $0x9a] sm:$0xff] }
  0x6b   : > { %775 = vmatpush.msra.mxu0 %v742_v47  ;;  %1132 = vmatpush.msra.mxu1 %v742_v47  ;;  %v1849_v47 = vld [vmem:[%s1658_s10 + $0x99] sm:$0xff]  ;;  %v330_v49 = vadd.f32 %v1664_v5, %v314_v37  ;;  %2256 = vst [vmem:[#allocation30_spill] sm:$0xff] %v1855_v51  ;;  %v613_v55 = vmul.f32 %v1708_v29, %v1667_v7  ;;  %v1879_v37 = vld [vmem:[%s1658_s10 + $0xb0] sm:$0xff] }
  0x6c   : > { %1136 = vmatpush.msra.mxu2 %v741_v57  ;;  %1137 = vmatpush.msra.mxu3 %v741_v57  ;;  %2255 = vst [vmem:[#allocation29_spill] sm:$0xff] %v1849_v47  ;;  %v675_v52 = vadd.f32 %v659_v54, %v625_v39  ;;  %v527_v53 = vadd.f32 %v511_v12, %v477_v41  ;;  %v288_v54 = vld [vmem:[%s1658_s10 + $0x8] sm:$0xff] }
  0x6d   : > { %801 = vmatmul.f32.vlgmr.msra.gmra.mxu2 %v733_v60  ;;  %776 = vmatpush.msra.mxu0 %v741_v57  ;;  %v1862_v60 = vld [vmem:[%s1658_s10 + $0x82] sm:$0xff]  ;;  %2258 = vst [vmem:[#allocation32_spill] sm:$0xff] %v1865_v61  ;;  %v380_v62 = vadd.f32 %v364_v38, %v330_v49  ;;  %v466_v63 = vmul.f32 %v1688_v17, %v1843_v43 }
  0x6e   : > { %813 = vmatmul.f32.vlgmr.msra.gmra.mxu3 %v737_v18  ;;  %1135 = vmatpush.msra.mxu1 %v741_v57  ;;  %v663_v57 = vmul.f32 %v1713_v31, %v1672_v9  ;;  %2257 = vst [vmem:[#allocation31_spill] sm:$0xff] %v1862_v60  ;;  %v318_v0 = vmul.f32 %v1669_v8, %v1846_v45  ;;  %v338_v38 = vld [vmem:[%s1658_s10 + $0x9] sm:$0xff] }
  0x6f   : > { %v368_v2 = vmul.f32 %v1674_v10, %v1849_v47  ;;  %v725_v12 = vadd.f32 %v709_v27, %v675_v52  ;;  %v577_v18 = vadd.f32 %v561_v42, %v527_v53  ;;  %v713_v19 = vmul.f32 %v1722_v36, %v1679_v13  ;;  %2259 = vst [vmem:[#allocation33_spill] sm:$0xff] %v1879_v37  ;;  %v388_v42 = vld [vmem:[%s1658_s10 + $0xa] sm:$0xff] }
  0x70   : > { %v516_v25 = vmul.f32 %v1696_v22, %v1855_v51  ;;  %v430_v39 = vadd.f32 %v414_v50, %v380_v62  ;;  %v566_v41 = vmul.f32 %v1701_v24, %v1862_v60  ;;  %v334_v49 = vadd.f32 %v1664_v5, %v318_v0  ;;  %v1893_v62 = vld [vmem:[%s1658_s10 + $0xb1] sm:$0xff]  ;;  %2269 = vst [vmem:[#allocation43_spill] sm:$0xff] %v1958_v34 }
  0x71   : > { %v418_v27 = vmul.f32 %v1681_v14, %v1865_v61  ;;  %777 = vmatmul.f32.vlgmr.msra.gmra.mxu0 %v725_v12  ;;  %v629_v52 = vadd.f32 %v613_v55, %v577_v18  ;;  %v618_v53 = vmul.f32 %v1708_v29, %v1846_v45  ;;  %v668_v50 = vmul.f32 %v1713_v31, %v1849_v47  ;;  %v1896_v60 = vld [vmem:[%s1658_s10 + $0xb2] sm:$0xff]  ;;  %v1902_v12 = vld [vmem:[%s1658_s10 + $0xc8] sm:$0xff]  ;;  %v1906_v45 = vld [vmem:[%s1658_s10 + $0x20] sm:$0xff] }
  0x72   : > { %2260 = vst [vmem:[#allocation34_spill] sm:$0xff] %v1893_v62  ;;  %v306_v0 = vmul.f32 %v1669_v8, %v288_v54  ;;  %v482_v13 = vadd.f32 %v466_v63, %v430_v39  ;;  %v384_v9 = vadd.f32 %v368_v2, %v334_v49  ;;  %v470_v55 = vmul.f32 %v1688_v17, %v1879_v37  ;;  %v1913_v54 = vld [vmem:[%s1658_s10 + $0x38] sm:$0xff] }
  0x73   : > { %2261 = vst [vmem:[#allocation35_spill] sm:$0xff] %v1896_v60  ;;  %v356_v18 = vmul.f32 %v1674_v10, %v338_v38  ;;  %v679_v47 = vadd.f32 %v663_v57, %v629_v52  ;;  %v718_v51 = vmul.f32 %v1722_v36, %v1865_v61  ;;  %v406_v2 = vmul.f32 %v1681_v14, %v388_v42  ;;  %v1916_v39 = vld [vmem:[%s1658_s10 + $0x39] sm:$0xff]  ;;  %v1923_v52 = vld [vmem:[%s1658_s10 + $0xc9] sm:$0xff] }
  0x74   : > { %2262 = vst [vmem:[#allocation36_spill] sm:$0xff] %v1902_v12  ;;  %v322_v63 = vadd.f32 %v1664_v5, %v306_v0  ;;  %v532_v49 = vadd.f32 %v516_v25, %v482_v13  ;;  %v434_v37 = vadd.f32 %v418_v27, %v384_v9  ;;  %v520_v38 = vmul.f32 %v1696_v22, %v1893_v62  ;;  %v1926_v61 = vld [vmem:[%s1658_s10 + $0xca] sm:$0xff]  ;;  %v1929_v0 = vld [vmem:[%s1658_s10 + $0x21] sm:$0xff] }
  0x75   : > { %2263 = vst [vmem:[#allocation37_spill] sm:$0xff] %v1906_v45  ;;  %v570_v57 = vmul.f32 %v1701_v24, %v1896_v60  ;;  %v729_v42 = vadd.f32 %v713_v19, %v679_v47  ;;  %v622_v43 = vmul.f32 %v1708_v29, %v1902_v12  ;;  %v458_v9 = vmul.f32 %v1688_v17, %v1906_v45  ;;  %v1936_v13 = vld [vmem:[%s1658_s10 + $0x3a] sm:$0xff]  ;;  %v1939_v60 = vld [vmem:[%s1658_s10 + $0x22] sm:$0xff]  ;;  %v1946_v19 = vld [vmem:[%s1658_s10 + $0x50] sm:$0xff] }
  0x76   : > { %2264 = vst [vmem:[#allocation38_spill] sm:$0xff] %v1913_v54  ;;  %v372_v7 = vadd.f32 %v356_v18, %v322_v63  ;;  %v582_v25 = vadd.f32 %v566_v41, %v532_v49  ;;  %v486_v27 = vadd.f32 %v470_v55, %v434_v37  ;;  %v310_v62 = vmul.f32 %v1669_v8, %v1913_v54 }
  0x77   : > { %2265 = vst [vmem:[#allocation39_spill] sm:$0xff] %v1923_v52  ;;  %v360_v47 = vmul.f32 %v1674_v10, %v1916_v39  ;;  %789 = vmatmul.f32.vlgmr.msra.gmra.mxu1 %v729_v42  ;;  %v672_v18 = vmul.f32 %v1713_v31, %v1923_v52  ;;  %v722_v63 = vmul.f32 %v1722_v36, %v1926_v61 }
  0x78   : > { %2266 = vst [vmem:[#allocation40_spill] sm:$0xff] %v1926_v61  ;;  %v422_v41 = vadd.f32 %v406_v2, %v372_v7  ;;  %v508_v37 = vmul.f32 %v1696_v22, %v1929_v0  ;;  %v634_v55 = vadd.f32 %v618_v53, %v582_v25  ;;  %v536_v49 = vadd.f32 %v520_v38, %v486_v27  ;;  %v1967_v25 = vld [vmem:[%s1658_s10 + $0x52] sm:$0xff] }
  0x79   : > { %2267 = vst [vmem:[#allocation41_spill] sm:$0xff] %v1939_v60  ;;  %v326_v45 = vadd.f32 %v1664_v5, %v310_v62  ;;  %v410_v12 = vmul.f32 %v1681_v14, %v1936_v13  ;;  %v558_v52 = vmul.f32 %v1701_v24, %v1939_v60  ;;  %v610_v61 = vmul.f32 %v1708_v29, %v1913_v54 }
  0x7a   : > { %2268 = vst [vmem:[#allocation42_spill] sm:$0xff] %v1946_v19  ;;  %v474_v42 = vadd.f32 %v458_v9, %v422_v41  ;;  %v462_v7 = vmul.f32 %v1688_v17, %v1946_v19  ;;  %v684_v2 = vadd.f32 %v668_v50, %v634_v55  ;;  %v586_v53 = vadd.f32 %v570_v57, %v536_v49 }
  0x7b   : > { %v376_v38 = vadd.f32 %v360_v47, %v326_v45  ;;  %v315_v62 = vmul.f32 %v1669_v8, %v1686_v16  ;;  %v512_v9 = vmul.f32 %v1696_v22, %v1958_v34  ;;  %v365_v41 = vmul.f32 %v1674_v10, %v1694_v21 }
  0x7c   : > { %v524_v27 = vadd.f32 %v508_v37, %v474_v42  ;;  %v415_v54 = vmul.f32 %v1681_v14, %v1699_v23  ;;  %v734_v60 = vadd.f32 %v718_v51, %v684_v2  ;;  %v638_v19 = vadd.f32 %v622_v43, %v586_v53 }
  0x7d   : > { %v426_v50 = vadd.f32 %v410_v12, %v376_v38  ;;  %v331_v45 = vadd.f32 %v1664_v5, %v315_v62  ;;  %v660_v47 = vmul.f32 %v1713_v31, %v1916_v39  ;;  %v710_v37 = vmul.f32 %v1722_v36, %v1936_v13 }
  0x7e   : > { %v574_v57 = vadd.f32 %v558_v52, %v524_v27  ;;  %v562_v55 = vmul.f32 %v1701_v24, %v1967_v25  ;;  %804 = vmatmul.f32.gmra.mxu2 %v734_v60  ;;  %v688_v49 = vadd.f32 %v672_v18, %v638_v19  ;;  %v467_v43 = vmul.f32 %v1688_v17, %v1706_v28 }
  0x7f   : > { %v478_v42 = vadd.f32 %v462_v7, %v426_v50  ;;  %v381_v34 = vadd.f32 %v365_v41, %v331_v45  ;;  %v614_v12 = vmul.f32 %v1708_v29, %v1819_v4  ;;  %v319_v52 = vmul.f32 %v1669_v8, %v1730_v40 }
  0x80   : > { %v626_v51 = vadd.f32 %v610_v61, %v574_v57  ;;  %v369_v2 = vmul.f32 %v1674_v10, %v1735_v44  ;;  %v738_v53 = vadd.f32 %v722_v63, %v688_v49  ;;  %v517_v60 = vmul.f32 %v1696_v22, %v1711_v30  ;;  %v1046_v57 = vld [vmem:[%s1658_s10 + $0xd8] sm:$0xff] }
  0x81   : > { %v528_v38 = vadd.f32 %v512_v9, %v478_v42  ;;  %v431_v62 = vadd.f32 %v415_v54, %v381_v34  ;;  %v664_v28 = vmul.f32 %v1713_v31, %v1822_v6  ;;  %v335_v61 = vadd.f32 %v1664_v5, %v319_v52 }
  0x82   : > { %v676_v19 = vadd.f32 %v660_v47, %v626_v51  ;;  %v419_v18 = vmul.f32 %v1681_v14, %v1742_v48  ;;  %816 = vmatmul.f32.gmra.mxu3 %v738_v53  ;;  %v714_v63 = vmul.f32 %v1722_v36, %v1832_v26  ;;  %v567_v34 = vmul.f32 %v1701_v24, %v1720_v35 }
  0x83   : > { %v578_v7 = vadd.f32 %v562_v55, %v528_v38  ;;  %v483_v27 = vadd.f32 %v467_v43, %v431_v62  ;;  %v619_v54 = vmul.f32 %v1708_v29, %v1730_v40  ;;  %v385_v9 = vadd.f32 %v369_v2, %v335_v61  ;;  %v1062_v43 = vld [vmem:[%s1658_s10 + $0xd9] sm:$0xff] }
  0x84   : > { %v726_v30 = vadd.f32 %v710_v37, %v676_v19  ;;  %v471_v41 = vmul.f32 %v1688_v17, %v1756_v58  ;;  %v307_v47 = vmul.f32 %v1669_v8, %v1766_v1  ;;  %v357_v55 = vmul.f32 %v1674_v10, %v1774_v11 }
  0x85   : > { %v630_v50 = vadd.f32 %v614_v12, %v578_v7  ;;  %v533_v45 = vadd.f32 %v517_v60, %v483_v27  ;;  %v669_v35 = vmul.f32 %v1713_v31, %v1735_v44  ;;  %v719_v40 = vmul.f32 %v1722_v36, %v1742_v48 }
  0x86   : > { %780 = vmatmul.f32.gmra.mxu0 %v726_v30  ;;  %v435_v37 = vadd.f32 %v419_v18, %v385_v9  ;;  %v521_v58 = vmul.f32 %v1696_v22, %v1759_v59  ;;  %v323_v1 = vadd.f32 %v1664_v5, %v307_v47  ;;  %v407_v11 = vmul.f32 %v1681_v14, %v1786_v32  ;;  %v1078_v59 = vld [vmem:[%s1658_s10 + $0xda] sm:$0xff] }
  0x87   : > { %v680_v49 = vadd.f32 %v664_v28, %v630_v50  ;;  %v583_v42 = vadd.f32 %v567_v34, %v533_v45  ;;  %v571_v12 = vmul.f32 %v1701_v24, %v1769_v3  ;;  %v623_v44 = vmul.f32 %v1708_v29, %v1046_v57  ;;  %v2271_v9 = vld [vmem:[#allocation23_spill] sm:$0xff] }
  0x88   : > { %v487_v51 = vadd.f32 %v471_v41, %v435_v37  ;;  %v459_v48 = vmul.f32 %v1688_v17, %v1781_v20  ;;  %v373_v53 = vadd.f32 %v357_v55, %v323_v1  ;;  %v311_v38 = vmul.f32 %v1669_v8, %v1801_v46  ;;  %v2272_v57 = vld [vmem:[#allocation27_spill] sm:$0xff]  ;;  %v2273_v55 = vld [vmem:[#allocation30_spill] sm:$0xff] }
  0x89   : > { %v730_v52 = vadd.f32 %v714_v63, %v680_v49  ;;  %v635_v2 = vadd.f32 %v619_v54, %v583_v42  ;;  %v673_v60 = vmul.f32 %v1713_v31, %v1062_v43  ;;  %v509_v32 = vmul.f32 %v1696_v22, %v1789_v33  ;;  %v2270_v63 = vld [vmem:[#allocation26_spill] sm:$0xff]  ;;  %v2275_v43 = vld [vmem:[#allocation25_spill] sm:$0xff] }
  0x8a   : > { %v537_v62 = vadd.f32 %v521_v58, %v487_v51  ;;  %v361_v3 = vmul.f32 %v1674_v10, %v1811_v56  ;;  %v423_v28 = vadd.f32 %v407_v11, %v373_v53  ;;  %v327_v20 = vadd.f32 %v1664_v5, %v311_v38  ;;  %v2274_v58 = vld [vmem:[#allocation24_spill] sm:$0xff]  ;;  %v2276_v11 = vld [vmem:[#allocation31_spill] sm:$0xff]  ;;  %v2278_v53 = vld [vmem:[#allocation33_spill] sm:$0xff] }
  0x8b   : > { %792 = vmatmul.f32.gmra.mxu1 %v730_v52  ;;  %v685_v19 = vadd.f32 %v669_v35, %v635_v2  ;;  %v411_v61 = vmul.f32 %v1681_v14, %v1829_v15  ;;  %v723_v7 = vmul.f32 %v1722_v36, %v1078_v59  ;;  %v559_v27 = vmul.f32 %v1701_v24, %v2270_v63  ;;  %v2277_v52 = vld [vmem:[#allocation28_spill] sm:$0xff] }
  0x8c   : > { %v587_v18 = vadd.f32 %v571_v12, %v537_v62  ;;  %v611_v33 = vmul.f32 %v1708_v29, %v1801_v46  ;;  %v475_v30 = vadd.f32 %v459_v48, %v423_v28  ;;  %v377_v54 = vadd.f32 %v361_v3, %v327_v20  ;;  %v2279_v62 = vld [vmem:[#allocation34_spill] sm:$0xff]  ;;  %v2280_v20 = vld [vmem:[#allocation29_spill] sm:$0xff] }
  0x8d   : > { %v735_v34 = vadd.f32 %v719_v40, %v685_v19  ;;  %v463_v41 = vmul.f32 %v1688_v17, %v2271_v9  ;;  %v661_v45 = vmul.f32 %v1713_v31, %v1811_v56  ;;  %v316_v47 = vmul.f32 %v1669_v8, %v2272_v57  ;;  %v2283_v9 = vld [vmem:[#allocation36_spill] sm:$0xff] }
  0x8e   : > { %v639_v50 = vadd.f32 %v623_v44, %v587_v18  ;;  %v366_v35 = vmul.f32 %v1674_v10, %v2273_v55  ;;  %v525_v37 = vadd.f32 %v509_v32, %v475_v30  ;;  %v711_v46 = vmul.f32 %v1722_v36, %v1829_v15 }
  0x8f   : > { %807 = vmatmul.f32.gmra.mxu2 %v735_v34  ;;  %v427_v40 = vadd.f32 %v411_v61, %v377_v54  ;;  %v513_v49 = vmul.f32 %v1696_v22, %v2274_v58  ;;  %v563_v1 = vmul.f32 %v1701_v24, %v2275_v43  ;;  %v332_v56 = vadd.f32 %v1664_v5, %v316_v47  ;;  %v2282_v34 = vld [vmem:[#allocation32_spill] sm:$0xff] }
  0x90   : > { %v689_v42 = vadd.f32 %v673_v60, %v639_v50  ;;  %v416_v51 = vmul.f32 %v1681_v14, %v2276_v11  ;;  %v575_v12 = vadd.f32 %v559_v27, %v525_v37  ;;  %v615_v48 = vmul.f32 %v1708_v29, %v1686_v16  ;;  %v2284_v50 = vld [vmem:[#allocation37_spill] sm:$0xff] }
  0x91   : > { %v479_v44 = vadd.f32 %v463_v41, %v427_v40  ;;  %v468_v15 = vmul.f32 %v1688_v17, %v2277_v52  ;;  %v382_v59 = vadd.f32 %v366_v35, %v332_v56  ;;  %v320_v38 = vmul.f32 %v1669_v8, %v2278_v53  ;;  %v2285_v40 = vld [vmem:[#allocation39_spill] sm:$0xff]  ;;  %v2286_v56 = vld [vmem:[#allocation41_spill] sm:$0xff] }
  0x92   : > { %v739_v2 = vadd.f32 %v723_v7, %v689_v42  ;;  %v370_v60 = vmul.f32 %v1674_v10, %v2279_v62  ;;  %v627_v32 = vadd.f32 %v611_v33, %v575_v12  ;;  %v665_v19 = vmul.f32 %v1713_v31, %v1694_v21  ;;  %v2281_v7 = vld [vmem:[#allocation35_spill] sm:$0xff] }
  0x93   : > { %v529_v3 = vadd.f32 %v513_v49, %v479_v44  ;;  %v715_v28 = vmul.f32 %v1722_v36, %v1699_v23  ;;  %v432_v16 = vadd.f32 %v416_v51, %v382_v59  ;;  %v518_v61 = vmul.f32 %v1696_v22, %v2280_v20  ;;  %v1047_v43 = vld [vmem:[%s1658_s10 + $0xe0] sm:$0xff] }
  0x94   : > { %819 = vmatmul.f32.gmra.mxu3 %v739_v2  ;;  %v336_v18 = vadd.f32 %v1664_v5, %v320_v38  ;;  %v420_v63 = vmul.f32 %v1681_v14, %v2281_v7  ;;  %v677_v27 = vadd.f32 %v661_v45, %v627_v32  ;;  %v568_v30 = vmul.f32 %v1701_v24, %v2282_v34  ;;  %v1063_v2 = vld [vmem:[%s1658_s10 + $0xe1] sm:$0xff] }
  0x95   : > { %v579_v33 = vadd.f32 %v563_v1, %v529_v3  ;;  %v620_v21 = vmul.f32 %v1708_v29, %v2278_v53  ;;  %v484_v23 = vadd.f32 %v468_v15, %v432_v16  ;;  %v472_v41 = vmul.f32 %v1688_v17, %v2283_v9  ;;  %v2288_v53 = vld [vmem:[#allocation38_spill] sm:$0xff] }
  0x96   : > { %v386_v54 = vadd.f32 %v370_v60, %v336_v18  ;;  %v308_v47 = vmul.f32 %v1669_v8, %v2284_v50  ;;  %v727_v35 = vadd.f32 %v711_v46, %v677_v27  ;;  %v522_v45 = vmul.f32 %v1696_v22, %v2285_v40  ;;  %v2289_v3 = vld [vmem:[#allocation42_spill] sm:$0xff] }
  0x97   : > { %v631_v37 = vadd.f32 %v615_v48, %v579_v33  ;;  %v358_v58 = vmul.f32 %v1674_v10, %v1929_v0  ;;  %v534_v49 = vadd.f32 %v518_v61, %v484_v23  ;;  %v408_v51 = vmul.f32 %v1681_v14, %v2286_v56  ;;  %v2287_v48 = vld [vmem:[#allocation40_spill] sm:$0xff] }
  0x98   : > { %v436_v42 = vadd.f32 %v420_v63, %v386_v54  ;;  %v324_v1 = vadd.f32 %v1664_v5, %v308_v47  ;;  %783 = vmatmul.f32.gmra.mxu0 %v727_v35  ;;  %v670_v46 = vmul.f32 %v1713_v31, %v2279_v62  ;;  %v720_v44 = vmul.f32 %v1722_v36, %v2281_v7  ;;  %v2290_v62 = vld [vmem:[#allocation43_spill] sm:$0xff] }
  0x99   : > { %v681_v12 = vadd.f32 %v665_v19, %v631_v37  ;;  %v572_v0 = vmul.f32 %v1701_v24, %v2287_v48  ;;  %v584_v52 = vadd.f32 %v568_v30, %v534_v49  ;;  %v460_v38 = vmul.f32 %v1688_v17, %v2288_v53  ;;  %v1079_v18 = vld [vmem:[%s1658_s10 + $0xe2] sm:$0xff]  ;;  %s1384_s10 = sshra.s32 %s861_s1, 4  ;;  %s1385_s10 = int_to_ptr.hbm [resolvable:$true] %s1384_s10 }
  0x9a   : > { %v488_v15 = vadd.f32 %v472_v41, %v436_v42  ;;  %v374_v59 = vadd.f32 %v358_v58, %v324_v1  ;;  %v624_v32 = vmul.f32 %v1708_v29, %v1047_v43  ;;  %v312_v19 = vmul.f32 %v1669_v8, %v2289_v3  ;;  %s1386_s30 = scalar_lea.hbm %s1385_s10, 128  ;;  %p1391_p10 = scmp.lt.s32.totalorder %s1385_s10, %s2205_s5 }
  0x9b   : > { %v731_v60 = vadd.f32 %v715_v28, %v681_v12  ;;  %v362_v16 = vmul.f32 %v1674_v10, %v2290_v62  ;;  %v636_v20 = vadd.f32 %v620_v21, %v584_v52  ;;  %v510_v63 = vmul.f32 %v1696_v22, %v1916_v39  ;;  %p1387_p6 = scmp.ne.s32.totalorder %s1385_s10, %s1386_s30  ;;  %p1392_p11 = scmp.lt.s32.totalorder %s1390_s17, %s1386_s30 }
  0x9c   : > { %v538_v61 = vadd.f32 %v522_v45, %v488_v15  ;;  %v424_v7 = vadd.f32 %v408_v51, %v374_v59  ;;  %v674_v27 = vmul.f32 %v1713_v31, %v1063_v2  ;;  %v328_v28 = vadd.f32 %v1664_v5, %v312_v19 }
  0x9d   : > { %795 = vmatmul.f32.gmra.mxu1 %v731_v60  ;;  %v412_v33 = vmul.f32 %v1681_v14, %v1967_v25  ;;  %v686_v34 = vadd.f32 %v670_v46, %v636_v20  ;;  %v560_v10 = vmul.f32 %v1701_v24, %v1936_v13  ;;  %v724_v21 = vmul.f32 %v1722_v36, %v1079_v18  ;;  %p1388_p7 = pnand %p1387_p6, %p1567_p3  ;;  %p1393_p12 = por %p1392_p11, %p1391_p10 }
  0x9e   : > { %v588_v8 = vadd.f32 %v572_v0, %v538_v61  ;;  %v476_v30 = vadd.f32 %v460_v38, %v424_v7  ;;  %v378_v23 = vadd.f32 %v362_v16, %v328_v28  ;;  %v464_v39 = vmul.f32 %v1688_v17, %v1819_v4 }
  0x9f   : > { %v736_v54 = vadd.f32 %v720_v44, %v686_v34  ;;  %v612_v5 = vmul.f32 %v1708_v29, %v2289_v3  ;;  %v514_v14 = vmul.f32 %v1696_v22, %v1822_v6  ;;  %v662_v13 = vmul.f32 %v1713_v31, %v2290_v62  ;;  %p1389_p9 = pneg %p1388_p7 }
  0xa0   : > { %v640_v9 = vadd.f32 %v624_v32, %v588_v8  ;;  %v526_v41 = vadd.f32 %v510_v63, %v476_v30  ;;  %v428_v50 = vadd.f32 %v412_v33, %v378_v23  ;;  %v564_v17 = vmul.f32 %v1701_v24, %v1832_v26 }
  0xa1   : > { %810 = vmatmul.f32.gmra.mxu2 %v736_v54  ;;  %v712_v45 = vmul.f32 %v1722_v36, %v1967_v25  ;;  %v616_v49 = vmul.f32 %v1708_v29, %v2272_v57  ;;  %v666_v42 = vmul.f32 %v1713_v31, %v2273_v55  ;;  %v716_v26 = vmul.f32 %v1722_v36, %v2276_v11  ;;  %v1253_v29 = vld [vmem:[%s2204_s4] ss:$0 sm:$0xff]  ;;  %p1394_p13 = pnand %p1393_p12, %p1389_p9 }
  0xa2   : > { %v690_v47 = vadd.f32 %v674_v27, %v640_v9  ;;  %v576_v35 = vadd.f32 %v560_v10, %v526_v41  ;;  %v480_v37 = vadd.f32 %v464_v39, %v428_v50 }
  0xa4   : > { %v740_v4 = vadd.f32 %v724_v21, %v690_v47  ;;  %v628_v40 = vadd.f32 %v612_v5, %v576_v35  ;;  %v530_v58 = vadd.f32 %v514_v14, %v480_v37 }
  0xa6   : > { %822 = vmatmul.f32.gmra.mxu3 %v740_v4  ;;  %v678_v22 = vadd.f32 %v662_v13, %v628_v40  ;;  %v580_v6 = vadd.f32 %v564_v17, %v530_v58 }
  0xa8   : > { %v728_v43 = vadd.f32 %v712_v45, %v678_v22  ;;  %v632_v24 = vadd.f32 %v616_v49, %v580_v6 }
  0xaa   : > { %786 = vmatmul.f32.gmra.mxu0 %v728_v43  ;;  %v682_v25 = vadd.f32 %v666_v42, %v632_v24 }
  0xac   : > { %v732_v1 = vadd.f32 %v716_v26, %v682_v25 }
  0xae   : > { %798 = vmatmul.f32.gmra.mxu1 %v732_v1 }
  0xee   : > { %v778_v56 = vpop.f32.mrf.mxu0 }
  0xef   : > { %v779_v51 = vadd.f32 %v1253_v29, %v778_v56 }
  0xf0   : > { %v802_v57 = vpop.f32.mrf.mxu2 }
  0xf1   : > { %v803_v31 = vadd.f32 %v1253_v29, %v802_v57  ;;  %v814_v55 = vpop.f32.mrf.mxu3  ;;  %826 = vst [vmem:[%s1656_s27] sm:$0xff] %v779_v51 }
  0xf2   : > { %v815_v12 = vadd.f32 %v1253_v29, %v814_v55 }
  0xf3   : > { %834 = vst [vmem:[%s1656_s27 + $0x40] sm:$0xff] %v803_v31 }
  0xf4   : > { %838 = vst [vmem:[%s1656_s27 + $0x60] sm:$0xff] %v815_v12  ;;  %v790_v36 = vpop.f32.mrf.mxu1 }
  0xf5   : > { %v791_v11 = vadd.f32 %v1253_v29, %v790_v36 }
  0xf7   : > { %830 = vst [vmem:[%s1656_s27 + $0x20] sm:$0xff] %v791_v11 }
 0x101   : > { %v805_v46 = vpop.f32.mrf.mxu2 }
 0x102   : > { %v806_v48 = vadd.f32 %v1253_v29, %v805_v46 }
 0x103   : > { %v781_v44 = vpop.f32.mrf.mxu0 }
 0x104   : > { %v782_v0 = vadd.f32 %v1253_v29, %v781_v44  ;;  %835 = vst [vmem:[%s1656_s27 + $0x48] sm:$0xff] %v806_v48 }
 0x105   : > { %v817_v52 = vpop.f32.mrf.mxu3 }
 0x106   : > { %827 = vst [vmem:[%s1656_s27 + $0x8] sm:$0xff] %v782_v0  ;;  %v818_v15 = vadd.f32 %v1253_v29, %v817_v52 }
 0x108   : > { %v793_v2 = vpop.f32.mrf.mxu1  ;;  %839 = vst [vmem:[%s1656_s27 + $0x68] sm:$0xff] %v818_v15 }
 0x109   : > { %v794_v59 = vadd.f32 %v1253_v29, %v793_v2 }
 0x10b   : > { %831 = vst [vmem:[%s1656_s27 + $0x28] sm:$0xff] %v794_v59 }
 0x112   : > { %v808_v53 = vpop.f32.mrf.mxu2 }
 0x113   : > { %v809_v38 = vadd.f32 %v1253_v29, %v808_v53 }
 0x115   : > { %836 = vst [vmem:[%s1656_s27 + $0x50] sm:$0xff] %v809_v38  ;;  %v784_v60 = vpop.f32.mrf.mxu0 }
 0x116   : > { %v785_v32 = vadd.f32 %v1253_v29, %v784_v60 }
 0x117   : > { %v820_v3 = vpop.f32.mrf.mxu3 }
 0x118   : > { %v821_v19 = vadd.f32 %v1253_v29, %v820_v3  ;;  %828 = vst [vmem:[%s1656_s27 + $0x10] sm:$0xff] %v785_v32 }
 0x11a   : > { %v796_v62 = vpop.f32.mrf.mxu1  ;;  %840 = vst [vmem:[%s1656_s27 + $0x70] sm:$0xff] %v821_v19 }
 0x11b   : > { %v797_v16 = vadd.f32 %v1253_v29, %v796_v62 }
 0x11d   : > { %832 = vst [vmem:[%s1656_s27 + $0x30] sm:$0xff] %v797_v16 }
 0x124   : > { %v811_v20 = vpop.f32.mrf.mxu2 }
 0x125   : > { %v812_v61 = vadd.f32 %v1253_v29, %v811_v20 }
 0x127   : > { %v787_v18 = vpop.f32.mrf.mxu0  ;;  %837 = vst [vmem:[%s1656_s27 + $0x58] sm:$0xff] %v812_v61 }
 0x128   : > { %v788_v7 = vadd.f32 %v1253_v29, %v787_v18 }
 0x129   : > { %v823_v63 = vpop.f32.mrf.mxu3 }
 0x12a   : > { %829 = vst [vmem:[%s1656_s27 + $0x18] sm:$0xff] %v788_v7  ;;  %v824_v27 = vadd.f32 %v1253_v29, %v823_v63 }
 0x12b   : > { %v799_v28 = vpop.f32.mrf.mxu1 }
 0x12c   : > { %841 = vst [vmem:[%s1656_s27 + $0x78] sm:$0xff] %v824_v27  ;;  %v800_v33 = vadd.f32 %v1253_v29, %v799_v28 }
 0x12e   : > { %833 = vst [vmem:[%s1656_s27 + $0x38] sm:$0xff] %v800_v33 }
 0x12f   : > { %1397 = shalt.err (!%p1394_p13)
}
 0x130   : > { %s1483_s27 = smov 128   ;;  %s1484_s12 = smov 8  }
 0x131   : > { %1150 = dma.vmem_to_hbm [thread:$0]  (%p1567_p3), %s859_s15, 2048, %s861_s1, %s843_s22, %s1483_s27, %s1483_s27, %s1484_s12  }
 0x132 PF: > { %p1169_p0 = scmp.ge.s32.totalorder %s1474_s25, 2  ;;  %s875_s6 = sand.u32 1, %s1446_s18  }
 0x133   : > { %s876_s14 = scalar_lea.sflag [#allocation6], %s875_s6 }
 0x134   : > { %p1160_p1 = pnand %p1169_p0, %p1576_p8 }
 0x136   : > { %p1161_p2 = pneg %p1160_p1 }
 0x138   : > { %1441 = dma.done.wait (%p1161_p2), %s876_s14, 2048  }
 0x139   : > { %1443 = vsyncadd (%p1161_p2), %s876_s14, 4294965248  ;;  %s20_s25 = sadd.s32 1, %s1474_s25   ;;  %s2292_s22 = sld [smem:[#allocation20_spill]] }
 0x13a   : > { %p17_p4 = scmp.ge.s32.totalorder %s20_s25, 6   ;;  %s2293_s7 = sld [smem:[#allocation21_spill]] }
 0x13b   : > { %s2294_s24 = sld [smem:[#allocation22_spill]]  ;;  %s2295_s18 = smov %s1450_s19 }
 0x13c   : > { %s2296_s19 = smov %s1454_s20  ;;  %s2297_s20 = smov %s1597_s16 }
 0x13d   : > { %s2298_s21 = smov %s1466_s23  ;;  %19 = sbr.rel (!%p17_p4) target bundleno = 9 (0x9), region = 104 }
 0x140   : > { %s2299_s23 = smov %s2293_s7 }
 0x142   :  { %882 = vsyncpa [#allocation5], 1 }
 0x143   :  { %884 = vsyncpa [#allocation5 + $0x1], 1 }
 0x144   :  { %885 = vsyncpa [#allocation8], 1 }
 0x145   :  { %886 = vsyncpa [#allocation6], 1 }
 0x146   :  { %888 = vsyncpa [#allocation6 + $0x1], 1 }
 0x147   :  { %889 = vsyncmov [#allocation3] }
 0x14a   :  { %s890_s8 = vpop.sfrf %889 }
 0x14b   :  { %p1087_p3 = scmp.ne.s32.totalorder %s890_s8, 0 }
 0x14d   :  { %894 = shalt.err (%p1087_p3)  }
 0x14e   :  { %896 = vsyncmov [#allocation3 + $0x1] }
 0x151   :  { %s897_s16 = vpop.sfrf %896 }
 0x152   :  { %p1088_p8 = scmp.ne.s32.totalorder %s897_s16, 0 }
 0x154   :  { %901 = shalt.err (%p1088_p8)  }

</bundles_post_ra>
